<compile_context>
chip_gen: v7x
topology: tpu7x:2x2x1
jax: 0.10.0
libtpu: 0.0.40
codegen_flags: <defaults>
</compile_context>

<pallas_src>
import functools

import jax
import jax.numpy as jnp
from jax.experimental import pallas as pl
from jax.experimental.pallas import tpu as pltpu


D_IMG = 512  # hard-coded in the PyTorch module's Conv2d(512, NFC, 1, 1)


# ----------------------------------------------------------------------------
# Kernel 1: batched 1x1-conv downsample for ALL layers/heads.
#   Reads the NCHW image as a (512, HW_tile) slab (no XLA transpose), computes
#   out = W_layer @ x  with W_layer = (H*NFC, 512) (all heads of one layer),
#   and stores a bf16, HW-major (lane-dense) tile.
# Grid = (BT, HW_tiles, L); the image slab index only depends on (BT, HW), so
# it stays resident across the inner L axis -> single HBM pass of the image.
# ----------------------------------------------------------------------------
def _downsample_kernel(x_ref, w_ref, b_ref, o_ref):
    # x: (512, T_HW) f32 straight from NCHW, w: (HNFC, 512) bf16, b: (HNFC, 1) f32
    x = x_ref[...].astype(jnp.bfloat16)
    acc = jnp.dot(w_ref[...], x, preferred_element_type=jnp.float32)
    o_ref[...] = (acc + b_ref[...]).astype(o_ref.dtype)   # bf16, HW lanes (dense)


def pallas_downsample(img_nchw, conv_w, conv_b, *, max_hw_tile=1024):
    """img_nchw: (BT, 512, HW) f32; conv_w: (L, HNFC, 512) bf16; conv_b: (L, HNFC, 1) f32.
    Returns (L, BT, HNFC, HW) bf16."""
    BT, D, HW = img_nchw.shape
    L, HNFC, Dw = conv_w.shape
    assert D == Dw == D_IMG

    # lane tile over HW: a multiple of 128 that divides HW when possible,
    # otherwise the full extent (block == full dim is always legal).
    if HW % 128 == 0:
        hw_tile = 128
        while hw_tile * 2 <= min(HW, max_hw_tile) and HW % (hw_tile * 2) == 0:
            hw_tile *= 2
    else:
        hw_tile = HW
    n_hw = HW // hw_tile

    return pl.pallas_call(
        _downsample_kernel,
        out_shape=jax.ShapeDtypeStruct((L, BT, HNFC, HW), jnp.bfloat16),
        grid=(BT, n_hw, L),
        in_specs=[
            pl.BlockSpec((None, D, hw_tile), lambda b, s, l: (b, 0, s)),   # image slab
            pl.BlockSpec((None, HNFC, D), lambda b, s, l: (l, 0, 0)),      # conv W (layer)
            pl.BlockSpec((None, HNFC, 1), lambda b, s, l: (l, 0, 0)),      # conv b (layer)
        ],
        out_specs=pl.BlockSpec((None, None, HNFC, hw_tile),
                               lambda b, s, l: (l, b, 0, s)),
        compiler_params=pltpu.CompilerParams(
            dimension_semantics=("parallel", "parallel", "arbitrary")),
    )(img_nchw, conv_w, conv_b)


# ----------------------------------------------------------------------------
# Kernel 2: fused per-LAYER transformer block, all heads batched.
#   emb (one matmul for all heads) -> per-head scores/softmax/context (batched
#   over the TB frame tile) -> +res -> band LayerNorm1 -> block-diag FFN ->
#   +res -> band LayerNorm2 -> lane-dense (TB, N*H*NFC) store.
# ----------------------------------------------------------------------------
def _layer_kernel(roi_ref, img_ref,
                  emb_w_ref, emb_b_ref,
                  ln1_g_ref, ln1_b_ref, m_ref,
                  w1_ref, fb1_ref, w2_ref, fb2_ref,
                  ln2_g_ref, ln2_b_ref,
                  o_ref, *, num_heads, nfc):
    eps = 1e-5
    tb, n, in_dim = roi_ref.shape
    hnfc = num_heads * nfc
    bn = tb * n

    # roi embedding: one matmul for ALL heads (heads live in lane bands).
    roi = roi_ref[...].reshape(bn, in_dim).astype(jnp.bfloat16)
    emb = jnp.dot(roi, emb_w_ref[...],
                  preferred_element_type=jnp.float32) + emb_b_ref[...]   # (bn, hnfc) f32

    img = img_ref[...]                      # (tb, hnfc, HW) bf16, lanes = HW
    emb3 = emb.reshape(tb, n, hnfc)

    # scores / softmax / context are inherently per-head (contraction over each
    # head's NFC band); batch over the TB frames with a single-batch-dim
    # dot_general per head.
    # TODO(synk): fold the head loop into one two-batch-dim dot_general once
    #             the emb lane->sublane relayout is known to be free.
    ctx_heads = []
    for h in range(num_heads):
        emb_h = emb3[:, :, h * nfc:(h + 1) * nfc].astype(jnp.bfloat16)   # (tb, n, nfc)
        img_h = img[:, h * nfc:(h + 1) * nfc, :]                         # (tb, nfc, HW)
        s = jax.lax.dot_general(emb_h, img_h, (((2,), (1,)), ((0,), (0,))),
                                preferred_element_type=jnp.float32)      # (tb, n, HW)
        s = s - jnp.max(s, axis=-1, keepdims=True)
        e = jnp.exp(s)
        attn = e * pl.reciprocal(jnp.sum(e, axis=-1, keepdims=True), approx=True)
        ctx_heads.append(
            jax.lax.dot_general(attn.astype(jnp.bfloat16), img_h,
                                (((2,), (2,)), ((0,), (0,))),
                                preferred_element_type=jnp.float32))     # (tb, n, nfc)
    ctx = jnp.concatenate(ctx_heads, axis=-1).reshape(bn, hnfc)          # f32

    # Per-head LayerNorm done band-wise via a block-diagonal averaging matmul:
    # each output lane receives the mean of its own head band -> no lane-split
    # reshapes, layout stays lane-dense.
    m = m_ref[...]                                                       # (hnfc, hnfc) f32

    def band_layernorm(v, g, b):
        mu = jnp.dot(v, m, preferred_element_type=jnp.float32)
        vc = v - mu
        var = jnp.dot(vc * vc, m, preferred_element_type=jnp.float32)
        return vc * jax.lax.rsqrt(var + eps) * g + b

    x = band_layernorm(ctx + emb, ln1_g_ref[...], ln1_b_ref[...])

    # FFN with block-diagonal weights == independent per-head Linear layers,
    # but a single K = H*NFC matmul.  ReLU in f32; dropout is identity (eval).
    h1 = jnp.dot(x.astype(jnp.bfloat16), w1_ref[...],
                 preferred_element_type=jnp.float32) + fb1_ref[...]
    h1 = jnp.maximum(h1, 0.0)
    f = jnp.dot(h1.astype(jnp.bfloat16), w2_ref[...],
                preferred_element_type=jnp.float32) + fb2_ref[...]

    y = band_layernorm(x + f, ln2_g_ref[...], ln2_b_ref[...])

    # lane-dense output: flatten the (n, hnfc) tail of each frame into one
    # >=128-lane row via lane concatenation (no minor-dim reshape needed).
    y3 = y.reshape(tb, n, hnfc)
    o_ref[...] = jnp.concatenate([y3[:, i, :] for i in range(n)],
                                 axis=-1).astype(o_ref.dtype)


def _pick_tb(bt, n):
    """Frames per grid step: TB*N >= 128 when possible; TB must be a multiple
    of 8 or equal to BT (sublane constraint of the output block)."""
    target = pl.cdiv(128, n)
    if bt <= target:
        return bt
    for cand in range(target, bt):
        if bt % cand == 0 and cand % 8 == 0:
            return cand
    return bt


def pallas_layer(roi3, img_all, layer, emb_w, emb_b, ln1_g, ln1_b, m_avg,
                 w1_bd, fb1, w2_bd, fb2, ln2_g, ln2_b, *, num_heads, nfc):
    BT, N, in_dim = roi3.shape
    L, BT2, HNFC, HW = img_all.shape
    assert BT2 == BT and HNFC == num_heads * nfc
    tb = _pick_tb(BT, N)
    grid = (BT // tb,)

    def rep(arr):
        nd = arr.ndim
        return pl.BlockSpec(arr.shape, lambda b, _nd=nd: (0,) * _nd)

    kernel = functools.partial(_layer_kernel, num_heads=num_heads, nfc=nfc)

    return pl.pallas_call(
        kernel,
        out_shape=jax.ShapeDtypeStruct((BT, N * HNFC), jnp.float32),
        grid=grid,
        in_specs=[
            pl.BlockSpec((tb, N, in_dim), lambda b: (b, 0, 0)),                  # roi
            pl.BlockSpec((None, tb, HNFC, HW), lambda b: (layer, b, 0, 0)),      # image (this layer)
            rep(emb_w), rep(emb_b),                                              # emb W/b (all heads)
            rep(ln1_g), rep(ln1_b), rep(m_avg),                                  # LN1 + band-avg M
            rep(w1_bd), rep(fb1), rep(w2_bd), rep(fb2),                          # block-diag FFN
            rep(ln2_g), rep(ln2_b),                                              # LN2
        ],
        out_specs=pl.BlockSpec((tb, N * HNFC), lambda b: (b, 0)),
        compiler_params=pltpu.CompilerParams(
            dimension_semantics=("parallel",)),
    )(roi3, img_all, emb_w, emb_b, ln1_g, ln1_b, m_avg,
      w1_bd, fb1, w2_bd, fb2, ln2_g, ln2_b)


# ----------------------------------------------------------------------------
# Parameter init (deterministic, mirrors module __init__ shapes).
# Linear weights stored as (in_dim, out_dim); conv weights as (out_ch, in_ch).
# ----------------------------------------------------------------------------
def init_params(key, num_layers, num_heads, NFC, NFB):
    params = []
    for layer in range(num_layers):
        in_dim = NFB if layer == 0 else NFC * num_heads
        for head in range(num_heads):
            k = jax.random.fold_in(key, layer * 131 + head)
            ks = jax.random.split(k, 6)
            p = {
                # downsample / downsample2 : Conv2d(512, NFC, k=1); weight (out, in)
                "conv_w": 0.03 * jax.random.normal(ks[0], (NFC, D_IMG), jnp.float32),
                "conv_b": 0.01 * jax.random.normal(ks[1], (NFC, 1), jnp.float32),
                # emb_roi : Linear(in_dim, NFC)
                "emb_w": 0.05 * jax.random.normal(ks[2], (in_dim, NFC), jnp.float32),
                "emb_b": 0.01 * jax.random.normal(ks[3], (1, NFC), jnp.float32),
                # layernorm1 / layernorm2
                "ln1_g": jnp.ones((1, NFC), jnp.float32),
                "ln1_b": jnp.zeros((1, NFC), jnp.float32),
                "ln2_g": jnp.ones((1, NFC), jnp.float32),
                "ln2_b": jnp.zeros((1, NFC), jnp.float32),
                # FFN : Linear(NFC, NFC) -> ReLU -> Linear(NFC, NFC)
                "ffn_w1": 0.1 * jax.random.normal(ks[4], (NFC, NFC), jnp.float32),
                "ffn_b1": jnp.zeros((1, NFC), jnp.float32),
                "ffn_w2": 0.1 * jax.random.normal(ks[5], (NFC, NFC), jnp.float32),
                "ffn_b2": jnp.zeros((1, NFC), jnp.float32),
            }
            params.append(p)
    return params


def _block_diag(mats):
    n = mats[0].shape[0]
    h = len(mats)
    out = jnp.zeros((h * n, h * n), mats[0].dtype)
    for i, m in enumerate(mats):
        out = out.at[i * n:(i + 1) * n, i * n:(i + 1) * n].set(m)
    return out


# ----------------------------------------------------------------------------
# Full Scene_Encoded_Transformer forward (glue in plain JAX; all reshapes here
# are layout-preserving / free — no HBM transpose passes remain).
# ----------------------------------------------------------------------------
def scene_encoded_transformer(roi_feature, image_feature, params,
                              num_layers, num_heads, N, NFC):
    BT, D, OH, OW = image_feature.shape
    assert D == D_IMG
    HW = OH * OW
    HNFC = num_heads * NFC

    # All layer*head 1x1 convs, packed per layer (bf16 weights, f32 bias).
    conv_w = jnp.stack(
        [jnp.concatenate([params[l * num_heads + h]["conv_w"]
                          for h in range(num_heads)], axis=0)
         for l in range(num_layers)], axis=0).astype(jnp.bfloat16)       # (L, HNFC, 512)
    conv_b = jnp.stack(
        [jnp.concatenate([params[l * num_heads + h]["conv_b"]
                          for h in range(num_heads)], axis=0)
         for l in range(num_layers)], axis=0)                            # (L, HNFC, 1)

    img_nchw = image_feature.reshape(BT, D, HW)          # free reshape, stays NCHW
    img_all = pallas_downsample(img_nchw, conv_w, conv_b)  # (L, BT, HNFC, HW) bf16

    # block-diag averaging matrix for band-wise (per-head) LayerNorm stats
    m_avg = jnp.kron(jnp.eye(num_heads, dtype=jnp.float32),
                     jnp.full((NFC, NFC), 1.0 / NFC, jnp.float32))       # (HNFC, HNFC)

    roi = roi_feature  # (BT*N, NFB) on entry
    for layer in range(num_layers):
        lp = params[layer * num_heads:(layer + 1) * num_heads]
        in_dim = roi.shape[1]

        emb_w = jnp.concatenate([p["emb_w"] for p in lp], axis=1).astype(jnp.bfloat16)
        emb_b = jnp.concatenate([p["emb_b"] for p in lp], axis=1)
        ln1_g = jnp.concatenate([p["ln1_g"] for p in lp], axis=1)
        ln1_b = jnp.concatenate([p["ln1_b"] for p in lp], axis=1)
        ln2_g = jnp.concatenate([p["ln2_g"] for p in lp], axis=1)
        ln2_b = jnp.concatenate([p["ln2_b"] for p in lp], axis=1)
        w1_bd = _block_diag([p["ffn_w1"] for p in lp]).astype(jnp.bfloat16)
        w2_bd = _block_diag([p["ffn_w2"] for p in lp]).astype(jnp.bfloat16)
        fb1 = jnp.concatenate([p["ffn_b1"] for p in lp], axis=1)
        fb2 = jnp.concatenate([p["ffn_b2"] for p in lp], axis=1)

        roi3 = roi.reshape(BT, N, in_dim)                                 # free
        out = pallas_layer(roi3, img_all, layer,
                           emb_w, emb_b, ln1_g, ln1_b, m_avg,
                           w1_bd, fb1, w2_bd, fb2, ln2_g, ln2_b,
                           num_heads=num_heads, nfc=NFC)                  # (BT, N*HNFC)
        roi = out.reshape(BT * N, HNFC)                                   # free
    return roi  # (BT*N, NFC * num_heads)


# ----------------------------------------------------------------------------
if __name__ == "__main__":
    # small, module-consistent shapes
    num_layers = 2
    num_heads_per_layer = 2
    NFC = 16          # num_features_context
    NFB = 32          # roi feature dim
    BT = 2            # B*T
    N = 4             # boxes per frame
    OH, OW = 8, 8     # image feature spatial dims

    key = jax.random.PRNGKey(0)
    k_roi, k_img, k_par = jax.random.split(key, 3)

    roi_feature = jax.random.normal(k_roi, (BT * N, NFB), jnp.float32)
    image_feature = jax.random.normal(k_img, (BT, D_IMG, OH, OW), jnp.float32)

    params = init_params(k_par, num_layers, num_heads_per_layer, NFC, NFB)

    fwd = jax.jit(functools.partial(scene_encoded_transformer,
                                    num_layers=num_layers,
                                    num_heads=num_heads_per_layer,
                                    N=N, NFC=NFC))
    out = fwd(roi_feature, image_feature, params)
    out = jax.block_until_ready(out)

    assert out.shape == (BT * N, NFC * num_heads_per_layer)
    assert bool(jnp.all(jnp.isfinite(out)))
    print("KERNEL_OK")
</pallas_src>

<mosaic_0001>
module attributes {stable_mosaic.version = 11 : i64} {
  func.func @_downsample_kernel(%arg0: i32, %arg1: i32, %arg2: i32, %arg3: memref<1x512x64xf32, #tpu.memory_space<vmem>>, %arg4: memref<1x32x512xbf16, #tpu.memory_space<vmem>>, %arg5: memref<1x32x1xf32, #tpu.memory_space<vmem>>, %arg6: memref<1x1x32x64xbf16, #tpu.memory_space<vmem>>) attributes {dimension_semantics = [#tpu.dimension_semantics<parallel>, #tpu.dimension_semantics<parallel>, #tpu.dimension_semantics<arbitrary>], iteration_bounds = array<i64: 2, 1, 2>, scalar_prefetch = 0 : i64, scratch_operands = 0 : i64, tpu.core_type = #tpu.core_type<tc>, window_params = [{transform_indices = @transform_0, window_bounds = array<i64: 1, 512, 64>}, {transform_indices = @transform_1, window_bounds = array<i64: 1, 32, 512>}, {transform_indices = @transform_2, window_bounds = array<i64: 1, 32, 1>}, {transform_indices = @transform_3, window_bounds = array<i64: 1, 1, 32, 64>}]} {
    %c0 = arith.constant 0 : index
    %c0_0 = arith.constant 0 : index
    %c0_1 = arith.constant 0 : index
    %0 = vector.load %arg3[%c0, %c0_0, %c0_1] : memref<1x512x64xf32, #tpu.memory_space<vmem>>, vector<1x512x64xf32>
    %1 = vector.shape_cast %0 : vector<1x512x64xf32> to vector<512x64xf32>
    %2 = arith.truncf %1 : vector<512x64xf32> to vector<512x64xbf16>
    %c0_2 = arith.constant 0 : index
    %c0_3 = arith.constant 0 : index
    %c0_4 = arith.constant 0 : index
    %3 = vector.load %arg4[%c0_2, %c0_3, %c0_4] : memref<1x32x512xbf16, #tpu.memory_space<vmem>>, vector<1x32x512xbf16>
    %4 = vector.shape_cast %3 : vector<1x32x512xbf16> to vector<32x512xbf16>
    %cst = arith.constant dense<0.000000e+00> : vector<32x64xf32>
    %5 = tpu.matmul %4, %2, %cst {dimension_numbers = #tpu.dot_dimension_numbers<[1], [0], [0], [1], [0, 0, 1, 1], [], []>} : vector<32x512xbf16>, vector<512x64xbf16>, vector<32x64xf32> -> vector<32x64xf32>
    %c0_5 = arith.constant 0 : index
    %c0_6 = arith.constant 0 : index
    %c0_7 = arith.constant 0 : index
    %6 = vector.load %arg5[%c0_5, %c0_6, %c0_7] : memref<1x32x1xf32, #tpu.memory_space<vmem>>, vector<1x32x1xf32>
    %7 = vector.shape_cast %6 : vector<1x32x1xf32> to vector<32x1xf32>
    %8 = vector.broadcast %7 : vector<32x1xf32> to vector<32x64xf32>
    %9 = arith.addf %5, %8 : vector<32x64xf32>
    %10 = arith.truncf %9 : vector<32x64xf32> to vector<32x64xbf16>
    %c0_8 = arith.constant 0 : index
    %c0_9 = arith.constant 0 : index
    %c0_10 = arith.constant 0 : index
    %c0_11 = arith.constant 0 : index
    %11 = vector.load %arg6[%c0_8, %c0_9, %c0_10, %c0_11] : memref<1x1x32x64xbf16, #tpu.memory_space<vmem>>, vector<1x1x32x64xbf16>
    %12 = vector.shape_cast %11 : vector<1x1x32x64xbf16> to vector<32x64xbf16>
    %13 = vector.shape_cast %10 : vector<32x64xbf16> to vector<1x1x32x64xbf16>
    tpu.vector_store %arg6[%c0_8, %c0_9, %c0_10, %c0_11], %13 {strides = array<i32>} : memref<1x1x32x64xbf16, #tpu.memory_space<vmem>>, vector<1x1x32x64xbf16>,
    return
  }
  func.func @transform_0(%arg0: i32, %arg1: i32, %arg2: i32) -> (i32, i32, i32) {
    %c0_i32 = arith.constant 0 : i32
    %c0_i32_0 = arith.constant 0 : i32
    return %arg0, %c0_i32, %arg1 : i32, i32, i32
  }
  func.func @transform_1(%arg0: i32, %arg1: i32, %arg2: i32) -> (i32, i32, i32) {
    %c0_i32 = arith.constant 0 : i32
    %c0_i32_0 = arith.constant 0 : i32
    %c0_i32_1 = arith.constant 0 : i32
    return %arg2, %c0_i32, %c0_i32_0 : i32, i32, i32
  }
  func.func @transform_2(%arg0: i32, %arg1: i32, %arg2: i32) -> (i32, i32, i32) {
    %c0_i32 = arith.constant 0 : i32
    %c0_i32_0 = arith.constant 0 : i32
    %c0_i32_1 = arith.constant 0 : i32
    return %arg2, %c0_i32, %c0_i32_0 : i32, i32, i32
  }
  func.func @transform_3(%arg0: i32, %arg1: i32, %arg2: i32) -> (i32, i32, i32, i32) {
    %c0_i32 = arith.constant 0 : i32
    %c0_i32_0 = arith.constant 0 : i32
    return %arg2, %arg0, %c0_i32, %arg1 : i32, i32, i32, i32
  }
}

module attributes {stable_mosaic.version = 11 : i64} {
  func.func @_layer_kernel(%arg0: i32, %arg1: memref<2x4x32xf32, #tpu.memory_space<vmem>>, %arg2: memref<1x2x32x64xbf16, #tpu.memory_space<vmem>>, %arg3: memref<32x32xbf16, #tpu.memory_space<vmem>>, %arg4: memref<1x32xf32, #tpu.memory_space<vmem>>, %arg5: memref<1x32xf32, #tpu.memory_space<vmem>>, %arg6: memref<1x32xf32, #tpu.memory_space<vmem>>, %arg7: memref<32x32xf32, #tpu.memory_space<vmem>>, %arg8: memref<32x32xbf16, #tpu.memory_space<vmem>>, %arg9: memref<1x32xf32, #tpu.memory_space<vmem>>, %arg10: memref<32x32xbf16, #tpu.memory_space<vmem>>, %arg11: memref<1x32xf32, #tpu.memory_space<vmem>>, %arg12: memref<1x32xf32, #tpu.memory_space<vmem>>, %arg13: memref<1x32xf32, #tpu.memory_space<vmem>>, %arg14: memref<2x128xf32, #tpu.memory_space<vmem>>) attributes {dimension_semantics = [#tpu.dimension_semantics<parallel>], iteration_bounds = array<i64: 1>, scalar_prefetch = 0 : i64, scratch_operands = 0 : i64, tpu.core_type = #tpu.core_type<tc>, window_params = [{transform_indices = @transform_0, window_bounds = array<i64: 2, 4, 32>}, {transform_indices = @transform_1, window_bounds = array<i64: 1, 2, 32, 64>}, {pipeline_mode = #tpu.pipeline_mode<synchronous>, transform_indices = @transform_2, window_bounds = array<i64: 32, 32>}, {pipeline_mode = #tpu.pipeline_mode<synchronous>, transform_indices = @transform_3, window_bounds = array<i64: 1, 32>}, {pipeline_mode = #tpu.pipeline_mode<synchronous>, transform_indices = @transform_4, window_bounds = array<i64: 1, 32>}, {pipeline_mode = #tpu.pipeline_mode<synchronous>, transform_indices = @transform_5, window_bounds = array<i64: 1, 32>}, {pipeline_mode = #tpu.pipeline_mode<synchronous>, transform_indices = @transform_6, window_bounds = array<i64: 32, 32>}, {pipeline_mode = #tpu.pipeline_mode<synchronous>, transform_indices = @transform_7, window_bounds = array<i64: 32, 32>}, {pipeline_mode = #tpu.pipeline_mode<synchronous>, transform_indices = @transform_8, window_bounds = array<i64: 1, 32>}, {pipeline_mode = #tpu.pipeline_mode<synchronous>, transform_indices = @transform_9, window_bounds = array<i64: 32, 32>}, {pipeline_mode = #tpu.pipeline_mode<synchronous>, transform_indices = @transform_10, window_bounds = array<i64: 1, 32>}, {pipeline_mode = #tpu.pipeline_mode<synchronous>, transform_indices = @transform_11, window_bounds = array<i64: 1, 32>}, {pipeline_mode = #tpu.pipeline_mode<synchronous>, transform_indices = @transform_12, window_bounds = array<i64: 1, 32>}, {transform_indices = @transform_13, window_bounds = array<i64: 2, 128>}]} {
    %c0 = arith.constant 0 : index
    %c0_0 = arith.constant 0 : index
    %c0_1 = arith.constant 0 : index
    %0 = vector.load %arg1[%c0, %c0_0, %c0_1] : memref<2x4x32xf32, #tpu.memory_space<vmem>>, vector<2x4x32xf32>
    %1 = vector.shape_cast %0 : vector<2x4x32xf32> to vector<8x32xf32>
    %2 = arith.truncf %1 : vector<8x32xf32> to vector<8x32xbf16>
    %c0_2 = arith.constant 0 : index
    %c0_3 = arith.constant 0 : index
    %3 = vector.load %arg3[%c0_2, %c0_3] : memref<32x32xbf16, #tpu.memory_space<vmem>>, vector<32x32xbf16>
    %cst = arith.constant dense<0.000000e+00> : vector<8x32xf32>
    %4 = tpu.matmul %2, %3, %cst {dimension_numbers = #tpu.dot_dimension_numbers<[1], [0], [0], [1], [0, 0, 1, 1], [], []>} : vector<8x32xbf16>, vector<32x32xbf16>, vector<8x32xf32> -> vector<8x32xf32>
    %c0_4 = arith.constant 0 : index
    %c0_5 = arith.constant 0 : index
    %5 = vector.load %arg4[%c0_4, %c0_5] : memref<1x32xf32, #tpu.memory_space<vmem>>, vector<1x32xf32>
    %6 = vector.broadcast %5 : vector<1x32xf32> to vector<8x32xf32>
    %7 = arith.addf %4, %6 : vector<8x32xf32>
    %c0_6 = arith.constant 0 : index
    %c0_7 = arith.constant 0 : index
    %c0_8 = arith.constant 0 : index
    %c0_9 = arith.constant 0 : index
    %8 = vector.load %arg2[%c0_6, %c0_7, %c0_8, %c0_9] : memref<1x2x32x64xbf16, #tpu.memory_space<vmem>>, vector<1x2x32x64xbf16>
    %9 = vector.shape_cast %8 : vector<1x2x32x64xbf16> to vector<2x32x64xbf16>
    %10 = vector.shape_cast %7 : vector<8x32xf32> to vector<2x4x32xf32>
    %11 = vector.extract_strided_slice %10 {offsets = [0, 0, 0], sizes = [2, 4, 16], strides = [1, 1, 1]} : vector<2x4x32xf32> to vector<2x4x16xf32>
    %12 = arith.truncf %11 : vector<2x4x16xf32> to vector<2x4x16xbf16>
    %13 = vector.extract_strided_slice %9 {offsets = [0, 0, 0], sizes = [2, 16, 64], strides = [1, 1, 1]} : vector<2x32x64xbf16> to vector<2x16x64xbf16>
    %cst_10 = arith.constant dense<0.000000e+00> : vector<2x4x64xf32>
    %14 = tpu.matmul %12, %13, %cst_10 {dimension_numbers = #tpu.dot_dimension_numbers<[2], [1], [1], [2], [0, 0, 0, 1, 1, 2], [0], [0]>} : vector<2x4x16xbf16>, vector<2x16x64xbf16>, vector<2x4x64xf32> -> vector<2x4x64xf32>
    %cst_11 = arith.constant dense<0xFF800000> : vector<2x4xf32>
    %15 = vector.multi_reduction <maximumf>, %14, %cst_11 [2] : vector<2x4x64xf32> to vector<2x4xf32>
    %16 = vector.shape_cast %15 : vector<2x4xf32> to vector<2x4x1xf32>
    %17 = vector.broadcast %16 : vector<2x4x1xf32> to vector<2x4x64xf32>
    %18 = arith.subf %14, %17 : vector<2x4x64xf32>
    %19 = math.exp %18 : vector<2x4x64xf32>
    %cst_12 = arith.constant dense<0.000000e+00> : vector<2x4xf32>
    %20 = vector.multi_reduction <add>, %19, %cst_12 [2] : vector<2x4x64xf32> to vector<2x4xf32>
    %21 = vector.shape_cast %20 : vector<2x4xf32> to vector<2x4x1xf32>
    %22 = tpu.reciprocal %21 {approx = true} : vector<2x4x1xf32> -> vector<2x4x1xf32>
    %23 = vector.broadcast %22 : vector<2x4x1xf32> to vector<2x4x64xf32>
    %24 = arith.mulf %19, %23 : vector<2x4x64xf32>
    %25 = arith.truncf %24 : vector<2x4x64xf32> to vector<2x4x64xbf16>
    %cst_13 = arith.constant dense<0.000000e+00> : vector<2x4x16xf32>
    %26 = tpu.matmul %25, %13, %cst_13 {dimension_numbers = #tpu.dot_dimension_numbers<[2], [2], [1], [1], [0, 0, 0, 1, 1, 1], [0], [0]>} : vector<2x4x64xbf16>, vector<2x16x64xbf16>, vector<2x4x16xf32> -> vector<2x4x16xf32>
    %27 = vector.extract_strided_slice %10 {offsets = [0, 0, 16], sizes = [2, 4, 16], strides = [1, 1, 1]} : vector<2x4x32xf32> to vector<2x4x16xf32>
    %28 = arith.truncf %27 : vector<2x4x16xf32> to vector<2x4x16xbf16>
    %29 = vector.extract_strided_slice %9 {offsets = [0, 16, 0], sizes = [2, 16, 64], strides = [1, 1, 1]} : vector<2x32x64xbf16> to vector<2x16x64xbf16>
    %cst_14 = arith.constant dense<0.000000e+00> : vector<2x4x64xf32>
    %30 = tpu.matmul %28, %29, %cst_14 {dimension_numbers = #tpu.dot_dimension_numbers<[2], [1], [1], [2], [0, 0, 0, 1, 1, 2], [0], [0]>} : vector<2x4x16xbf16>, vector<2x16x64xbf16>, vector<2x4x64xf32> -> vector<2x4x64xf32>
    %cst_15 = arith.constant dense<0xFF800000> : vector<2x4xf32>
    %31 = vector.multi_reduction <maximumf>, %30, %cst_15 [2] : vector<2x4x64xf32> to vector<2x4xf32>
    %32 = vector.shape_cast %31 : vector<2x4xf32> to vector<2x4x1xf32>
    %33 = vector.broadcast %32 : vector<2x4x1xf32> to vector<2x4x64xf32>
    %34 = arith.subf %30, %33 : vector<2x4x64xf32>
    %35 = math.exp %34 : vector<2x4x64xf32>
    %cst_16 = arith.constant dense<0.000000e+00> : vector<2x4xf32>
    %36 = vector.multi_reduction <add>, %35, %cst_16 [2] : vector<2x4x64xf32> to vector<2x4xf32>
    %37 = vector.shape_cast %36 : vector<2x4xf32> to vector<2x4x1xf32>
    %38 = tpu.reciprocal %37 {approx = true} : vector<2x4x1xf32> -> vector<2x4x1xf32>
    %39 = vector.broadcast %38 : vector<2x4x1xf32> to vector<2x4x64xf32>
    %40 = arith.mulf %35, %39 : vector<2x4x64xf32>
    %41 = arith.truncf %40 : vector<2x4x64xf32> to vector<2x4x64xbf16>
    %cst_17 = arith.constant dense<0.000000e+00> : vector<2x4x16xf32>
    %42 = tpu.matmul %41, %29, %cst_17 {dimension_numbers = #tpu.dot_dimension_numbers<[2], [2], [1], [1], [0, 0, 0, 1, 1, 1], [0], [0]>} : vector<2x4x64xbf16>, vector<2x16x64xbf16>, vector<2x4x16xf32> -> vector<2x4x16xf32>
    %43 = tpu.concatenate %26, %42 in 2 : vector<2x4x16xf32>, vector<2x4x16xf32> -> vector<2x4x32xf32>
    %44 = vector.shape_cast %43 : vector<2x4x32xf32> to vector<8x32xf32>
    %c0_18 = arith.constant 0 : index
    %c0_19 = arith.constant 0 : index
    %45 = vector.load %arg7[%c0_18, %c0_19] : memref<32x32xf32, #tpu.memory_space<vmem>>, vector<32x32xf32>
    %46 = arith.addf %44, %7 : vector<8x32xf32>
    %c0_20 = arith.constant 0 : index
    %c0_21 = arith.constant 0 : index
    %47 = vector.load %arg5[%c0_20, %c0_21] : memref<1x32xf32, #tpu.memory_space<vmem>>, vector<1x32xf32>
    %c0_22 = arith.constant 0 : index
    %c0_23 = arith.constant 0 : index
    %48 = vector.load %arg6[%c0_22, %c0_23] : memref<1x32xf32, #tpu.memory_space<vmem>>, vector<1x32xf32>
    %cst_24 = arith.constant dense<0.000000e+00> : vector<8x32xf32>
    %49 = tpu.matmul %46, %45, %cst_24 {dimension_numbers = #tpu.dot_dimension_numbers<[1], [0], [0], [1], [0, 0, 1, 1], [], []>} : vector<8x32xf32>, vector<32x32xf32>, vector<8x32xf32> -> vector<8x32xf32>
    %50 = arith.subf %46, %49 : vector<8x32xf32>
    %51 = arith.mulf %50, %50 : vector<8x32xf32>
    %cst_25 = arith.constant dense<0.000000e+00> : vector<8x32xf32>
    %52 = tpu.matmul %51, %45, %cst_25 {dimension_numbers = #tpu.dot_dimension_numbers<[1], [0], [0], [1], [0, 0, 1, 1], [], []>} : vector<8x32xf32>, vector<32x32xf32>, vector<8x32xf32> -> vector<8x32xf32>
    %cst_26 = arith.constant 9.99999974E-6 : f32
    %53 = vector.broadcast %cst_26 : f32 to vector<8x32xf32>
    %54 = arith.addf %52, %53 : vector<8x32xf32>
    %55 = math.rsqrt %54 : vector<8x32xf32>
    %56 = arith.mulf %50, %55 : vector<8x32xf32>
    %57 = vector.broadcast %47 : vector<1x32xf32> to vector<8x32xf32>
    %58 = arith.mulf %56, %57 : vector<8x32xf32>
    %59 = vector.broadcast %48 : vector<1x32xf32> to vector<8x32xf32>
    %60 = arith.addf %58, %59 : vector<8x32xf32>
    %61 = arith.truncf %60 : vector<8x32xf32> to vector<8x32xbf16>
    %c0_27 = arith.constant 0 : index
    %c0_28 = arith.constant 0 : index
    %62 = vector.load %arg8[%c0_27, %c0_28] : memref<32x32xbf16, #tpu.memory_space<vmem>>, vector<32x32xbf16>
    %cst_29 = arith.constant dense<0.000000e+00> : vector<8x32xf32>
    %63 = tpu.matmul %61, %62, %cst_29 {dimension_numbers = #tpu.dot_dimension_numbers<[1], [0], [0], [1], [0, 0, 1, 1], [], []>} : vector<8x32xbf16>, vector<32x32xbf16>, vector<8x32xf32> -> vector<8x32xf32>
    %c0_30 = arith.constant 0 : index
    %c0_31 = arith.constant 0 : index
    %64 = vector.load %arg9[%c0_30, %c0_31] : memref<1x32xf32, #tpu.memory_space<vmem>>, vector<1x32xf32>
    %65 = vector.broadcast %64 : vector<1x32xf32> to vector<8x32xf32>
    %66 = arith.addf %63, %65 : vector<8x32xf32>
    %cst_32 = arith.constant 0.000000e+00 : f32
    %67 = vector.broadcast %cst_32 : f32 to vector<8x32xf32>
    %68 = arith.maximumf %66, %67 : vector<8x32xf32>
    %69 = arith.truncf %68 : vector<8x32xf32> to vector<8x32xbf16>
    %c0_33 = arith.constant 0 : index
    %c0_34 = arith.constant 0 : index
    %70 = vector.load %arg10[%c0_33, %c0_34] : memref<32x32xbf16, #tpu.memory_space<vmem>>, vector<32x32xbf16>
    %cst_35 = arith.constant dense<0.000000e+00> : vector<8x32xf32>
    %71 = tpu.matmul %69, %70, %cst_35 {dimension_numbers = #tpu.dot_dimension_numbers<[1], [0], [0], [1], [0, 0, 1, 1], [], []>} : vector<8x32xbf16>, vector<32x32xbf16>, vector<8x32xf32> -> vector<8x32xf32>
    %c0_36 = arith.constant 0 : index
    %c0_37 = arith.constant 0 : index
    %72 = vector.load %arg11[%c0_36, %c0_37] : memref<1x32xf32, #tpu.memory_space<vmem>>, vector<1x32xf32>
    %73 = vector.broadcast %72 : vector<1x32xf32> to vector<8x32xf32>
    %74 = arith.addf %71, %73 : vector<8x32xf32>
    %75 = arith.addf %60, %74 : vector<8x32xf32>
    %c0_38 = arith.constant 0 : index
    %c0_39 = arith.constant 0 : index
    %76 = vector.load %arg12[%c0_38, %c0_39] : memref<1x32xf32, #tpu.memory_space<vmem>>, vector<1x32xf32>
    %c0_40 = arith.constant 0 : index
    %c0_41 = arith.constant 0 : index
    %77 = vector.load %arg13[%c0_40, %c0_41] : memref<1x32xf32, #tpu.memory_space<vmem>>, vector<1x32xf32>
    %cst_42 = arith.constant dense<0.000000e+00> : vector<8x32xf32>
    %78 = tpu.matmul %75, %45, %cst_42 {dimension_numbers = #tpu.dot_dimension_numbers<[1], [0], [0], [1], [0, 0, 1, 1], [], []>} : vector<8x32xf32>, vector<32x32xf32>, vector<8x32xf32> -> vector<8x32xf32>
    %79 = arith.subf %75, %78 : vector<8x32xf32>
    %80 = arith.mulf %79, %79 : vector<8x32xf32>
    %cst_43 = arith.constant dense<0.000000e+00> : vector<8x32xf32>
    %81 = tpu.matmul %80, %45, %cst_43 {dimension_numbers = #tpu.dot_dimension_numbers<[1], [0], [0], [1], [0, 0, 1, 1], [], []>} : vector<8x32xf32>, vector<32x32xf32>, vector<8x32xf32> -> vector<8x32xf32>
    %cst_44 = arith.constant 9.99999974E-6 : f32
    %82 = vector.broadcast %cst_44 : f32 to vector<8x32xf32>
    %83 = arith.addf %81, %82 : vector<8x32xf32>
    %84 = math.rsqrt %83 : vector<8x32xf32>
    %85 = arith.mulf %79, %84 : vector<8x32xf32>
    %86 = vector.broadcast %76 : vector<1x32xf32> to vector<8x32xf32>
    %87 = arith.mulf %85, %86 : vector<8x32xf32>
    %88 = vector.broadcast %77 : vector<1x32xf32> to vector<8x32xf32>
    %89 = arith.addf %87, %88 : vector<8x32xf32>
    %90 = vector.shape_cast %89 : vector<8x32xf32> to vector<2x4x32xf32>
    %91 = vector.extract_strided_slice %90 {offsets = [0, 0, 0], sizes = [2, 1, 32], strides = [1, 1, 1]} : vector<2x4x32xf32> to vector<2x1x32xf32>
    %92 = vector.shape_cast %91 : vector<2x1x32xf32> to vector<2x32xf32>
    %93 = vector.extract_strided_slice %90 {offsets = [0, 1, 0], sizes = [2, 1, 32], strides = [1, 1, 1]} : vector<2x4x32xf32> to vector<2x1x32xf32>
    %94 = vector.shape_cast %93 : vector<2x1x32xf32> to vector<2x32xf32>
    %95 = vector.extract_strided_slice %90 {offsets = [0, 2, 0], sizes = [2, 1, 32], strides = [1, 1, 1]} : vector<2x4x32xf32> to vector<2x1x32xf32>
    %96 = vector.shape_cast %95 : vector<2x1x32xf32> to vector<2x32xf32>
    %97 = vector.extract_strided_slice %90 {offsets = [0, 3, 0], sizes = [2, 1, 32], strides = [1, 1, 1]} : vector<2x4x32xf32> to vector<2x1x32xf32>
    %98 = vector.shape_cast %97 : vector<2x1x32xf32> to vector<2x32xf32>
    %99 = tpu.concatenate %92, %94, %96, %98 in 1 : vector<2x32xf32>, vector<2x32xf32>, vector<2x32xf32>, vector<2x32xf32> -> vector<2x128xf32>
    %c0_45 = arith.constant 0 : index
    %c0_46 = arith.constant 0 : index
    %100 = vector.load %arg14[%c0_45, %c0_46] : memref<2x128xf32, #tpu.memory_space<vmem>>, vector<2x128xf32>
    tpu.vector_store %arg14[%c0_45, %c0_46], %99 {strides = array<i32>} : memref<2x128xf32, #tpu.memory_space<vmem>>, vector<2x128xf32>,
    return
  }
  func.func @transform_0(%arg0: i32) -> (i32, i32, i32) {
    %c0_i32 = arith.constant 0 : i32
    %c0_i32_0 = arith.constant 0 : i32
    %c0_i32_1 = arith.constant 0 : i32
    return %arg0, %c0_i32, %c0_i32_0 : i32, i32, i32
  }
  func.func @transform_1(%arg0: i32) -> (i32, i32, i32, i32) {
    %c0_i32 = arith.constant 0 : i32
    %c0_i32_0 = arith.constant 0 : i32
    %c0_i32_1 = arith.constant 0 : i32
    %c0_i32_2 = arith.constant 0 : i32
    return %c0_i32, %arg0, %c0_i32_0, %c0_i32_1 : i32, i32, i32, i32
  }
  func.func @transform_2(%arg0: i32) -> (i32, i32) {
    %c0_i32 = arith.constant 0 : i32
    %c0_i32_0 = arith.constant 0 : i32
    %c0_i32_1 = arith.constant 0 : i32
    return %c0_i32, %c0_i32_0 : i32, i32
  }
  func.func @transform_3(%arg0: i32) -> (i32, i32) {
    %c0_i32 = arith.constant 0 : i32
    %c0_i32_0 = arith.constant 0 : i32
    %c0_i32_1 = arith.constant 0 : i32
    return %c0_i32, %c0_i32_0 : i32, i32
  }
  func.func @transform_4(%arg0: i32) -> (i32, i32) {
    %c0_i32 = arith.constant 0 : i32
    %c0_i32_0 = arith.constant 0 : i32
    %c0_i32_1 = arith.constant 0 : i32
    return %c0_i32, %c0_i32_0 : i32, i32
  }
  func.func @transform_5(%arg0: i32) -> (i32, i32) {
    %c0_i32 = arith.constant 0 : i32
    %c0_i32_0 = arith.constant 0 : i32
    %c0_i32_1 = arith.constant 0 : i32
    return %c0_i32, %c0_i32_0 : i32, i32
  }
  func.func @transform_6(%arg0: i32) -> (i32, i32) {
    %c0_i32 = arith.constant 0 : i32
    %c0_i32_0 = arith.constant 0 : i32
    %c0_i32_1 = arith.constant 0 : i32
    return %c0_i32, %c0_i32_0 : i32, i32
  }
  func.func @transform_7(%arg0: i32) -> (i32, i32) {
    %c0_i32 = arith.constant 0 : i32
    %c0_i32_0 = arith.constant 0 : i32
    %c0_i32_1 = arith.constant 0 : i32
    return %c0_i32, %c0_i32_0 : i32, i32
  }
  func.func @transform_8(%arg0: i32) -> (i32, i32) {
    %c0_i32 = arith.constant 0 : i32
    %c0_i32_0 = arith.constant 0 : i32
    %c0_i32_1 = arith.constant 0 : i32
    return %c0_i32, %c0_i32_0 : i32, i32
  }
  func.func @transform_9(%arg0: i32) -> (i32, i32) {
    %c0_i32 = arith.constant 0 : i32
    %c0_i32_0 = arith.constant 0 : i32
    %c0_i32_1 = arith.constant 0 : i32
    return %c0_i32, %c0_i32_0 : i32, i32
  }
  func.func @transform_10(%arg0: i32) -> (i32, i32) {
    %c0_i32 = arith.constant 0 : i32
    %c0_i32_0 = arith.constant 0 : i32
    %c0_i32_1 = arith.constant 0 : i32
    return %c0_i32, %c0_i32_0 : i32, i32
  }
  func.func @transform_11(%arg0: i32) -> (i32, i32) {
    %c0_i32 = arith.constant 0 : i32
    %c0_i32_0 = arith.constant 0 : i32
    %c0_i32_1 = arith.constant 0 : i32
    return %c0_i32, %c0_i32_0 : i32, i32
  }
  func.func @transform_12(%arg0: i32) -> (i32, i32) {
    %c0_i32 = arith.constant 0 : i32
    %c0_i32_0 = arith.constant 0 : i32
    %c0_i32_1 = arith.constant 0 : i32
    return %c0_i32, %c0_i32_0 : i32, i32
  }
  func.func @transform_13(%arg0: i32) -> (i32, i32) {
    %c0_i32 = arith.constant 0 : i32
    %c0_i32_0 = arith.constant 0 : i32
    return %arg0, %c0_i32 : i32, i32
  }
}

module attributes {stable_mosaic.version = 11 : i64} {
  func.func @_layer_kernel(%arg0: i32, %arg1: memref<2x4x32xf32, #tpu.memory_space<vmem>>, %arg2: memref<1x2x32x64xbf16, #tpu.memory_space<vmem>>, %arg3: memref<32x32xbf16, #tpu.memory_space<vmem>>, %arg4: memref<1x32xf32, #tpu.memory_space<vmem>>, %arg5: memref<1x32xf32, #tpu.memory_space<vmem>>, %arg6: memref<1x32xf32, #tpu.memory_space<vmem>>, %arg7: memref<32x32xf32, #tpu.memory_space<vmem>>, %arg8: memref<32x32xbf16, #tpu.memory_space<vmem>>, %arg9: memref<1x32xf32, #tpu.memory_space<vmem>>, %arg10: memref<32x32xbf16, #tpu.memory_space<vmem>>, %arg11: memref<1x32xf32, #tpu.memory_space<vmem>>, %arg12: memref<1x32xf32, #tpu.memory_space<vmem>>, %arg13: memref<1x32xf32, #tpu.memory_space<vmem>>, %arg14: memref<2x128xf32, #tpu.memory_space<vmem>>) attributes {dimension_semantics = [#tpu.dimension_semantics<parallel>], iteration_bounds = array<i64: 1>, scalar_prefetch = 0 : i64, scratch_operands = 0 : i64, tpu.core_type = #tpu.core_type<tc>, window_params = [{transform_indices = @transform_0, window_bounds = array<i64: 2, 4, 32>}, {transform_indices = @transform_1, window_bounds = array<i64: 1, 2, 32, 64>}, {pipeline_mode = #tpu.pipeline_mode<synchronous>, transform_indices = @transform_2, window_bounds = array<i64: 32, 32>}, {pipeline_mode = #tpu.pipeline_mode<synchronous>, transform_indices = @transform_3, window_bounds = array<i64: 1, 32>}, {pipeline_mode = #tpu.pipeline_mode<synchronous>, transform_indices = @transform_4, window_bounds = array<i64: 1, 32>}, {pipeline_mode = #tpu.pipeline_mode<synchronous>, transform_indices = @transform_5, window_bounds = array<i64: 1, 32>}, {pipeline_mode = #tpu.pipeline_mode<synchronous>, transform_indices = @transform_6, window_bounds = array<i64: 32, 32>}, {pipeline_mode = #tpu.pipeline_mode<synchronous>, transform_indices = @transform_7, window_bounds = array<i64: 32, 32>}, {pipeline_mode = #tpu.pipeline_mode<synchronous>, transform_indices = @transform_8, window_bounds = array<i64: 1, 32>}, {pipeline_mode = #tpu.pipeline_mode<synchronous>, transform_indices = @transform_9, window_bounds = array<i64: 32, 32>}, {pipeline_mode = #tpu.pipeline_mode<synchronous>, transform_indices = @transform_10, window_bounds = array<i64: 1, 32>}, {pipeline_mode = #tpu.pipeline_mode<synchronous>, transform_indices = @transform_11, window_bounds = array<i64: 1, 32>}, {pipeline_mode = #tpu.pipeline_mode<synchronous>, transform_indices = @transform_12, window_bounds = array<i64: 1, 32>}, {transform_indices = @transform_13, window_bounds = array<i64: 2, 128>}]} {
    %c0 = arith.constant 0 : index
    %c0_0 = arith.constant 0 : index
    %c0_1 = arith.constant 0 : index
    %0 = vector.load %arg1[%c0, %c0_0, %c0_1] : memref<2x4x32xf32, #tpu.memory_space<vmem>>, vector<2x4x32xf32>
    %1 = vector.shape_cast %0 : vector<2x4x32xf32> to vector<8x32xf32>
    %2 = arith.truncf %1 : vector<8x32xf32> to vector<8x32xbf16>
    %c0_2 = arith.constant 0 : index
    %c0_3 = arith.constant 0 : index
    %3 = vector.load %arg3[%c0_2, %c0_3] : memref<32x32xbf16, #tpu.memory_space<vmem>>, vector<32x32xbf16>
    %cst = arith.constant dense<0.000000e+00> : vector<8x32xf32>
    %4 = tpu.matmul %2, %3, %cst {dimension_numbers = #tpu.dot_dimension_numbers<[1], [0], [0], [1], [0, 0, 1, 1], [], []>} : vector<8x32xbf16>, vector<32x32xbf16>, vector<8x32xf32> -> vector<8x32xf32>
    %c0_4 = arith.constant 0 : index
    %c0_5 = arith.constant 0 : index
    %5 = vector.load %arg4[%c0_4, %c0_5] : memref<1x32xf32, #tpu.memory_space<vmem>>, vector<1x32xf32>
    %6 = vector.broadcast %5 : vector<1x32xf32> to vector<8x32xf32>
    %7 = arith.addf %4, %6 : vector<8x32xf32>
    %c0_6 = arith.constant 0 : index
    %c0_7 = arith.constant 0 : index
    %c0_8 = arith.constant 0 : index
    %c0_9 = arith.constant 0 : index
    %8 = vector.load %arg2[%c0_6, %c0_7, %c0_8, %c0_9] : memref<1x2x32x64xbf16, #tpu.memory_space<vmem>>, vector<1x2x32x64xbf16>
    %9 = vector.shape_cast %8 : vector<1x2x32x64xbf16> to vector<2x32x64xbf16>
    %10 = vector.shape_cast %7 : vector<8x32xf32> to vector<2x4x32xf32>
    %11 = vector.extract_strided_slice %10 {offsets = [0, 0, 0], sizes = [2, 4, 16], strides = [1, 1, 1]} : vector<2x4x32xf32> to vector<2x4x16xf32>
    %12 = arith.truncf %11 : vector<2x4x16xf32> to vector<2x4x16xbf16>
    %13 = vector.extract_strided_slice %9 {offsets = [0, 0, 0], sizes = [2, 16, 64], strides = [1, 1, 1]} : vector<2x32x64xbf16> to vector<2x16x64xbf16>
    %cst_10 = arith.constant dense<0.000000e+00> : vector<2x4x64xf32>
    %14 = tpu.matmul %12, %13, %cst_10 {dimension_numbers = #tpu.dot_dimension_numbers<[2], [1], [1], [2], [0, 0, 0, 1, 1, 2], [0], [0]>} : vector<2x4x16xbf16>, vector<2x16x64xbf16>, vector<2x4x64xf32> -> vector<2x4x64xf32>
    %cst_11 = arith.constant dense<0xFF800000> : vector<2x4xf32>
    %15 = vector.multi_reduction <maximumf>, %14, %cst_11 [2] : vector<2x4x64xf32> to vector<2x4xf32>
    %16 = vector.shape_cast %15 : vector<2x4xf32> to vector<2x4x1xf32>
    %17 = vector.broadcast %16 : vector<2x4x1xf32> to vector<2x4x64xf32>
    %18 = arith.subf %14, %17 : vector<2x4x64xf32>
    %19 = math.exp %18 : vector<2x4x64xf32>
    %cst_12 = arith.constant dense<0.000000e+00> : vector<2x4xf32>
    %20 = vector.multi_reduction <add>, %19, %cst_12 [2] : vector<2x4x64xf32> to vector<2x4xf32>
    %21 = vector.shape_cast %20 : vector<2x4xf32> to vector<2x4x1xf32>
    %22 = tpu.reciprocal %21 {approx = true} : vector<2x4x1xf32> -> vector<2x4x1xf32>
    %23 = vector.broadcast %22 : vector<2x4x1xf32> to vector<2x4x64xf32>
    %24 = arith.mulf %19, %23 : vector<2x4x64xf32>
    %25 = arith.truncf %24 : vector<2x4x64xf32> to vector<2x4x64xbf16>
    %cst_13 = arith.constant dense<0.000000e+00> : vector<2x4x16xf32>
    %26 = tpu.matmul %25, %13, %cst_13 {dimension_numbers = #tpu.dot_dimension_numbers<[2], [2], [1], [1], [0, 0, 0, 1, 1, 1], [0], [0]>} : vector<2x4x64xbf16>, vector<2x16x64xbf16>, vector<2x4x16xf32> -> vector<2x4x16xf32>
    %27 = vector.extract_strided_slice %10 {offsets = [0, 0, 16], sizes = [2, 4, 16], strides = [1, 1, 1]} : vector<2x4x32xf32> to vector<2x4x16xf32>
    %28 = arith.truncf %27 : vector<2x4x16xf32> to vector<2x4x16xbf16>
    %29 = vector.extract_strided_slice %9 {offsets = [0, 16, 0], sizes = [2, 16, 64], strides = [1, 1, 1]} : vector<2x32x64xbf16> to vector<2x16x64xbf16>
    %cst_14 = arith.constant dense<0.000000e+00> : vector<2x4x64xf32>
    %30 = tpu.matmul %28, %29, %cst_14 {dimension_numbers = #tpu.dot_dimension_numbers<[2], [1], [1], [2], [0, 0, 0, 1, 1, 2], [0], [0]>} : vector<2x4x16xbf16>, vector<2x16x64xbf16>, vector<2x4x64xf32> -> vector<2x4x64xf32>
    %cst_15 = arith.constant dense<0xFF800000> : vector<2x4xf32>
    %31 = vector.multi_reduction <maximumf>, %30, %cst_15 [2] : vector<2x4x64xf32> to vector<2x4xf32>
    %32 = vector.shape_cast %31 : vector<2x4xf32> to vector<2x4x1xf32>
    %33 = vector.broadcast %32 : vector<2x4x1xf32> to vector<2x4x64xf32>
    %34 = arith.subf %30, %33 : vector<2x4x64xf32>
    %35 = math.exp %34 : vector<2x4x64xf32>
    %cst_16 = arith.constant dense<0.000000e+00> : vector<2x4xf32>
    %36 = vector.multi_reduction <add>, %35, %cst_16 [2] : vector<2x4x64xf32> to vector<2x4xf32>
    %37 = vector.shape_cast %36 : vector<2x4xf32> to vector<2x4x1xf32>
    %38 = tpu.reciprocal %37 {approx = true} : vector<2x4x1xf32> -> vector<2x4x1xf32>
    %39 = vector.broadcast %38 : vector<2x4x1xf32> to vector<2x4x64xf32>
    %40 = arith.mulf %35, %39 : vector<2x4x64xf32>
    %41 = arith.truncf %40 : vector<2x4x64xf32> to vector<2x4x64xbf16>
    %cst_17 = arith.constant dense<0.000000e+00> : vector<2x4x16xf32>
    %42 = tpu.matmul %41, %29, %cst_17 {dimension_numbers = #tpu.dot_dimension_numbers<[2], [2], [1], [1], [0, 0, 0, 1, 1, 1], [0], [0]>} : vector<2x4x64xbf16>, vector<2x16x64xbf16>, vector<2x4x16xf32> -> vector<2x4x16xf32>
    %43 = tpu.concatenate %26, %42 in 2 : vector<2x4x16xf32>, vector<2x4x16xf32> -> vector<2x4x32xf32>
    %44 = vector.shape_cast %43 : vector<2x4x32xf32> to vector<8x32xf32>
    %c0_18 = arith.constant 0 : index
    %c0_19 = arith.constant 0 : index
    %45 = vector.load %arg7[%c0_18, %c0_19] : memref<32x32xf32, #tpu.memory_space<vmem>>, vector<32x32xf32>
    %46 = arith.addf %44, %7 : vector<8x32xf32>
    %c0_20 = arith.constant 0 : index
    %c0_21 = arith.constant 0 : index
    %47 = vector.load %arg5[%c0_20, %c0_21] : memref<1x32xf32, #tpu.memory_space<vmem>>, vector<1x32xf32>
    %c0_22 = arith.constant 0 : index
    %c0_23 = arith.constant 0 : index
    %48 = vector.load %arg6[%c0_22, %c0_23] : memref<1x32xf32, #tpu.memory_space<vmem>>, vector<1x32xf32>
    %cst_24 = arith.constant dense<0.000000e+00> : vector<8x32xf32>
    %49 = tpu.matmul %46, %45, %cst_24 {dimension_numbers = #tpu.dot_dimension_numbers<[1], [0], [0], [1], [0, 0, 1, 1], [], []>} : vector<8x32xf32>, vector<32x32xf32>, vector<8x32xf32> -> vector<8x32xf32>
    %50 = arith.subf %46, %49 : vector<8x32xf32>
    %51 = arith.mulf %50, %50 : vector<8x32xf32>
    %cst_25 = arith.constant dense<0.000000e+00> : vector<8x32xf32>
    %52 = tpu.matmul %51, %45, %cst_25 {dimension_numbers = #tpu.dot_dimension_numbers<[1], [0], [0], [1], [0, 0, 1, 1], [], []>} : vector<8x32xf32>, vector<32x32xf32>, vector<8x32xf32> -> vector<8x32xf32>
    %cst_26 = arith.constant 9.99999974E-6 : f32
    %53 = vector.broadcast %cst_26 : f32 to vector<8x32xf32>
    %54 = arith.addf %52, %53 : vector<8x32xf32>
    %55 = math.rsqrt %54 : vector<8x32xf32>
    %56 = arith.mulf %50, %55 : vector<8x32xf32>
    %57 = vector.broadcast %47 : vector<1x32xf32> to vector<8x32xf32>
    %58 = arith.mulf %56, %57 : vector<8x32xf32>
    %59 = vector.broadcast %48 : vector<1x32xf32> to vector<8x32xf32>
    %60 = arith.addf %58, %59 : vector<8x32xf32>
    %61 = arith.truncf %60 : vector<8x32xf32> to vector<8x32xbf16>
    %c0_27 = arith.constant 0 : index
    %c0_28 = arith.constant 0 : index
    %62 = vector.load %arg8[%c0_27, %c0_28] : memref<32x32xbf16, #tpu.memory_space<vmem>>, vector<32x32xbf16>
    %cst_29 = arith.constant dense<0.000000e+00> : vector<8x32xf32>
    %63 = tpu.matmul %61, %62, %cst_29 {dimension_numbers = #tpu.dot_dimension_numbers<[1], [0], [0], [1], [0, 0, 1, 1], [], []>} : vector<8x32xbf16>, vector<32x32xbf16>, vector<8x32xf32> -> vector<8x32xf32>
    %c0_30 = arith.constant 0 : index
    %c0_31 = arith.constant 0 : index
    %64 = vector.load %arg9[%c0_30, %c0_31] : memref<1x32xf32, #tpu.memory_space<vmem>>, vector<1x32xf32>
    %65 = vector.broadcast %64 : vector<1x32xf32> to vector<8x32xf32>
    %66 = arith.addf %63, %65 : vector<8x32xf32>
    %cst_32 = arith.constant 0.000000e+00 : f32
    %67 = vector.broadcast %cst_32 : f32 to vector<8x32xf32>
    %68 = arith.maximumf %66, %67 : vector<8x32xf32>
    %69 = arith.truncf %68 : vector<8x32xf32> to vector<8x32xbf16>
    %c0_33 = arith.constant 0 : index
    %c0_34 = arith.constant 0 : index
    %70 = vector.load %arg10[%c0_33, %c0_34] : memref<32x32xbf16, #tpu.memory_space<vmem>>, vector<32x32xbf16>
    %cst_35 = arith.constant dense<0.000000e+00> : vector<8x32xf32>
    %71 = tpu.matmul %69, %70, %cst_35 {dimension_numbers = #tpu.dot_dimension_numbers<[1], [0], [0], [1], [0, 0, 1, 1], [], []>} : vector<8x32xbf16>, vector<32x32xbf16>, vector<8x32xf32> -> vector<8x32xf32>
    %c0_36 = arith.constant 0 : index
    %c0_37 = arith.constant 0 : index
    %72 = vector.load %arg11[%c0_36, %c0_37] : memref<1x32xf32, #tpu.memory_space<vmem>>, vector<1x32xf32>
    %73 = vector.broadcast %72 : vector<1x32xf32> to vector<8x32xf32>
    %74 = arith.addf %71, %73 : vector<8x32xf32>
    %75 = arith.addf %60, %74 : vector<8x32xf32>
    %c0_38 = arith.constant 0 : index
    %c0_39 = arith.constant 0 : index
    %76 = vector.load %arg12[%c0_38, %c0_39] : memref<1x32xf32, #tpu.memory_space<vmem>>, vector<1x32xf32>
    %c0_40 = arith.constant 0 : index
    %c0_41 = arith.constant 0 : index
    %77 = vector.load %arg13[%c0_40, %c0_41] : memref<1x32xf32, #tpu.memory_space<vmem>>, vector<1x32xf32>
    %cst_42 = arith.constant dense<0.000000e+00> : vector<8x32xf32>
    %78 = tpu.matmul %75, %45, %cst_42 {dimension_numbers = #tpu.dot_dimension_numbers<[1], [0], [0], [1], [0, 0, 1, 1], [], []>} : vector<8x32xf32>, vector<32x32xf32>, vector<8x32xf32> -> vector<8x32xf32>
    %79 = arith.subf %75, %78 : vector<8x32xf32>
    %80 = arith.mulf %79, %79 : vector<8x32xf32>
    %cst_43 = arith.constant dense<0.000000e+00> : vector<8x32xf32>
    %81 = tpu.matmul %80, %45, %cst_43 {dimension_numbers = #tpu.dot_dimension_numbers<[1], [0], [0], [1], [0, 0, 1, 1], [], []>} : vector<8x32xf32>, vector<32x32xf32>, vector<8x32xf32> -> vector<8x32xf32>
    %cst_44 = arith.constant 9.99999974E-6 : f32
    %82 = vector.broadcast %cst_44 : f32 to vector<8x32xf32>
    %83 = arith.addf %81, %82 : vector<8x32xf32>
    %84 = math.rsqrt %83 : vector<8x32xf32>
    %85 = arith.mulf %79, %84 : vector<8x32xf32>
    %86 = vector.broadcast %76 : vector<1x32xf32> to vector<8x32xf32>
    %87 = arith.mulf %85, %86 : vector<8x32xf32>
    %88 = vector.broadcast %77 : vector<1x32xf32> to vector<8x32xf32>
    %89 = arith.addf %87, %88 : vector<8x32xf32>
    %90 = vector.shape_cast %89 : vector<8x32xf32> to vector<2x4x32xf32>
    %91 = vector.extract_strided_slice %90 {offsets = [0, 0, 0], sizes = [2, 1, 32], strides = [1, 1, 1]} : vector<2x4x32xf32> to vector<2x1x32xf32>
    %92 = vector.shape_cast %91 : vector<2x1x32xf32> to vector<2x32xf32>
    %93 = vector.extract_strided_slice %90 {offsets = [0, 1, 0], sizes = [2, 1, 32], strides = [1, 1, 1]} : vector<2x4x32xf32> to vector<2x1x32xf32>
    %94 = vector.shape_cast %93 : vector<2x1x32xf32> to vector<2x32xf32>
    %95 = vector.extract_strided_slice %90 {offsets = [0, 2, 0], sizes = [2, 1, 32], strides = [1, 1, 1]} : vector<2x4x32xf32> to vector<2x1x32xf32>
    %96 = vector.shape_cast %95 : vector<2x1x32xf32> to vector<2x32xf32>
    %97 = vector.extract_strided_slice %90 {offsets = [0, 3, 0], sizes = [2, 1, 32], strides = [1, 1, 1]} : vector<2x4x32xf32> to vector<2x1x32xf32>
    %98 = vector.shape_cast %97 : vector<2x1x32xf32> to vector<2x32xf32>
    %99 = tpu.concatenate %92, %94, %96, %98 in 1 : vector<2x32xf32>, vector<2x32xf32>, vector<2x32xf32>, vector<2x32xf32> -> vector<2x128xf32>
    %c0_45 = arith.constant 0 : index
    %c0_46 = arith.constant 0 : index
    %100 = vector.load %arg14[%c0_45, %c0_46] : memref<2x128xf32, #tpu.memory_space<vmem>>, vector<2x128xf32>
    tpu.vector_store %arg14[%c0_45, %c0_46], %99 {strides = array<i32>} : memref<2x128xf32, #tpu.memory_space<vmem>>, vector<2x128xf32>,
    return
  }
  func.func @transform_0(%arg0: i32) -> (i32, i32, i32) {
    %c0_i32 = arith.constant 0 : i32
    %c0_i32_0 = arith.constant 0 : i32
    %c0_i32_1 = arith.constant 0 : i32
    return %arg0, %c0_i32, %c0_i32_0 : i32, i32, i32
  }
  func.func @transform_1(%arg0: i32) -> (i32, i32, i32, i32) {
    %c1_i32 = arith.constant 1 : i32
    %c0_i32 = arith.constant 0 : i32
    %c0_i32_0 = arith.constant 0 : i32
    %c0_i32_1 = arith.constant 0 : i32
    return %c1_i32, %arg0, %c0_i32, %c0_i32_0 : i32, i32, i32, i32
  }
  func.func @transform_2(%arg0: i32) -> (i32, i32) {
    %c0_i32 = arith.constant 0 : i32
    %c0_i32_0 = arith.constant 0 : i32
    %c0_i32_1 = arith.constant 0 : i32
    return %c0_i32, %c0_i32_0 : i32, i32
  }
  func.func @transform_3(%arg0: i32) -> (i32, i32) {
    %c0_i32 = arith.constant 0 : i32
    %c0_i32_0 = arith.constant 0 : i32
    %c0_i32_1 = arith.constant 0 : i32
    return %c0_i32, %c0_i32_0 : i32, i32
  }
  func.func @transform_4(%arg0: i32) -> (i32, i32) {
    %c0_i32 = arith.constant 0 : i32
    %c0_i32_0 = arith.constant 0 : i32
    %c0_i32_1 = arith.constant 0 : i32
    return %c0_i32, %c0_i32_0 : i32, i32
  }
  func.func @transform_5(%arg0: i32) -> (i32, i32) {
    %c0_i32 = arith.constant 0 : i32
    %c0_i32_0 = arith.constant 0 : i32
    %c0_i32_1 = arith.constant 0 : i32
    return %c0_i32, %c0_i32_0 : i32, i32
  }
  func.func @transform_6(%arg0: i32) -> (i32, i32) {
    %c0_i32 = arith.constant 0 : i32
    %c0_i32_0 = arith.constant 0 : i32
    %c0_i32_1 = arith.constant 0 : i32
    return %c0_i32, %c0_i32_0 : i32, i32
  }
  func.func @transform_7(%arg0: i32) -> (i32, i32) {
    %c0_i32 = arith.constant 0 : i32
    %c0_i32_0 = arith.constant 0 : i32
    %c0_i32_1 = arith.constant 0 : i32
    return %c0_i32, %c0_i32_0 : i32, i32
  }
  func.func @transform_8(%arg0: i32) -> (i32, i32) {
    %c0_i32 = arith.constant 0 : i32
    %c0_i32_0 = arith.constant 0 : i32
    %c0_i32_1 = arith.constant 0 : i32
    return %c0_i32, %c0_i32_0 : i32, i32
  }
  func.func @transform_9(%arg0: i32) -> (i32, i32) {
    %c0_i32 = arith.constant 0 : i32
    %c0_i32_0 = arith.constant 0 : i32
    %c0_i32_1 = arith.constant 0 : i32
    return %c0_i32, %c0_i32_0 : i32, i32
  }
  func.func @transform_10(%arg0: i32) -> (i32, i32) {
    %c0_i32 = arith.constant 0 : i32
    %c0_i32_0 = arith.constant 0 : i32
    %c0_i32_1 = arith.constant 0 : i32
    return %c0_i32, %c0_i32_0 : i32, i32
  }
  func.func @transform_11(%arg0: i32) -> (i32, i32) {
    %c0_i32 = arith.constant 0 : i32
    %c0_i32_0 = arith.constant 0 : i32
    %c0_i32_1 = arith.constant 0 : i32
    return %c0_i32, %c0_i32_0 : i32, i32
  }
  func.func @transform_12(%arg0: i32) -> (i32, i32) {
    %c0_i32 = arith.constant 0 : i32
    %c0_i32_0 = arith.constant 0 : i32
    %c0_i32_1 = arith.constant 0 : i32
    return %c0_i32, %c0_i32_0 : i32, i32
  }
  func.func @transform_13(%arg0: i32) -> (i32, i32) {
    %c0_i32 = arith.constant 0 : i32
    %c0_i32_0 = arith.constant 0 : i32
    return %arg0, %c0_i32 : i32, i32
  }
}

</mosaic_0001>

<bundles_post_ra>
// kernel: scene_encoded_transformer.3
= control target key start
LH: loop header
LB: loop body
LE: loop exit
PB: predicated region body
PF: predicated region fallthrough
CT: control target
= control target key end

     0   :  { %s883_s12 = smov 0   ;;  %s885_s13 = smov 0   ;;  %s1035_s0 = inlined_call_operand.vmem [shape: f32[2,512,64], index: 0, kind: input, shape index: {}]   ;;  %s1036_s1 = inlined_call_operand.vmem [shape: bf16[2,32,512], index: 1, kind: input, shape index: {}]   ;;  %s1037_s2 = inlined_call_operand.vmem [shape: f32[2,32,1], index: 2, kind: input, shape index: {}]   ;;  %s1038_s3 = inlined_call_operand.vmem [shape: bf16[2,2,32,64], index: 3, kind: output, shape index: {}]  }
   0x1   :  { %s887_s14 = smov 0   ;;  %s889_s15 = smov 0  }
   0x2   :  { %s891_s16 = smov 0  }
   0x3 LB: > { %s25_s17 = sadd.s32 1, %s852_s14  ;;  %s32_s18 = sadd.s32 1, %s856_s15  ;;  %s860_s16 = sphi %s891_s16, %s13_s16   ;;  %s856_s15 = sphi %s889_s15, %s1042_s15   ;;  %s852_s14 = sphi %s887_s14, %s1041_s14   ;;  %s848_s13 = sphi %s885_s13, %s1040_s13   ;;  %s844_s12 = sphi %s883_s12, %s1039_s12  }
   0x4   : > { %p26_p0 = scmp.ge.s32.totalorder %s25_s17, 2  ;;  %p680_p1 = scmp.ge.s32.totalorder %s860_s16, 1 }
   0x5   : > { %p185_p2 = scmp.lt.s32.totalorder %s860_s16, 5 }
   0x6   : > { %s1044_s17 = smov (%p26_p0, %s25_s17), 0  ;;  %s1046_s18 = smov (!%p26_p0, %s32_s18), %s856_s15 }
   0x7   : > { %p186_p3 = pnand %p680_p1, %p185_p2  ;;  %p34_p4 = scmp.ge.s32.totalorder %s1046_s18, 2 }
   0x8   : > { %p229_p5 = scmp.lt.s32.totalorder (!%p186_p3), %s848_s13, 1  ;;  %v862_v0 = vmov (!%p186_p3), 0   ;;  %p237_p6 = scmp.lt.s32.totalorder (!%p186_p3), %s844_s12, 1  ;;  %vm542_vm0 = vcmask (!%p186_p3), 519168  }
   0x9   : > { %s1048_s18 = smov (%p34_p4, %s1046_s18), 0  ;;  %189 = sbr.rel (%p186_p3) target bundleno = 287 (0x11f), region = 32 }
   0xa   : > { %808 = vset.pattern.permute.xlu0 (!%p186_p3), %v862_v0  ;;  %809 = vset.pattern.permute.xlu1 (!%p186_p3), %v862_v0 }
  0x10   : > { %s1050_s13 = smov (!%p229_p5, %s848_s13), 1  ;;  %s1052_s12 = smov (!%p237_p6, %s844_s12), 1 }
  0x11   : > { %s704_s19 = sshll.u32 %s1050_s13, 9  ;;  %s705_s23 = sshll.u32 %s1052_s12, 6 }
  0x12   : > { %s921_s22 = scalar_lea.vmem %s1035_s0, %s704_s19  ;;  %s987_s26 = scalar_lea.vmem %s1036_s1, %s705_s23 }
  0x13   : > { %v276_v1 = vld [vmem:[%s921_s22 + $0x80] sm:$0xff]  ;;  %v277_v2 = vld [vmem:[%s921_s22 + $0x88] sm:$0xff]  ;;  %v278_v12 = vld [vmem:[%s921_s22 + $0x90] sm:$0xff]  ;;  %s706_s27 = sshll.u32 %s1052_s12, 5  ;;  %s687_s4 = sshll.u32 %s1050_s13, 2 }
  0x14   : > { %v308_v3 = vld [vmem:[%s921_s22 + $0x180] sm:$0xff]  ;;  %v332_v4 = vpack.c.bf16 %v277_v2, %v276_v1  ;;  %v309_v5 = vld [vmem:[%s921_s22 + $0x188] sm:$0xff]  ;;  %v279_v14 = vld [vmem:[%s921_s22 + $0x98] sm:$0xff]  ;;  %s246_s30 = scalar_lea.vmem %s1037_s2, %s706_s27  ;;  %s688_s5 = sshll.u32 %s1052_s12, 3 }
  0x15   : > { %v260_v6 = vld [vmem:[%s921_s22] sm:$0xff]  ;;  %v261_v7 = vld [vmem:[%s921_s22 + $0x8] sm:$0xff]  ;;  %v348_v8 = vpack.c.bf16 %v309_v5, %v308_v3  ;;  %v310_v15 = vld [vmem:[%s921_s22 + $0x190] sm:$0xff]  ;;  %v333_v17 = vpack.c.bf16 %v279_v14, %v278_v12  ;;  %s256_s6 = sadd.s32 %s688_s5, %s687_s4 }
  0x16   : > { %v324_v9 = vpack.c.bf16 %v261_v7, %v260_v6  ;;  %v292_v10 = vld [vmem:[%s921_s22 + $0x100] sm:$0xff]  ;;  %v293_v11 = vld [vmem:[%s921_s22 + $0x108] sm:$0xff]  ;;  %711 = vmatprep.subr.bf16.mxu0 %v332_v4  ;;  %v311_v16 = vld [vmem:[%s921_s22 + $0x198] sm:$0xff]  ;;  %s689_s7 = sshll.u32 %s256_s6, 2 }
  0x17   : > { %v340_v13 = vpack.c.bf16 %v293_v11, %v292_v10  ;;  %739 = vmatprep.subr.bf16.mxu1 %v348_v8  ;;  %v349_v18 = vpack.c.bf16 %v311_v16, %v310_v15  ;;  %v262_v19 = vld [vmem:[%s921_s22 + $0x10] sm:$0xff]  ;;  %v263_v20 = vld [vmem:[%s921_s22 + $0x18] sm:$0xff]  ;;  %v280_v24 = vld [vmem:[%s921_s22 + $0xa0] sm:$0xff]  ;;  %s258_s10 = scalar_lea.vmem %s1038_s3, %s689_s7 }
  0x18   : > { %712 = vmatpush3.bf16.msra.mxu0 %v324_v9  ;;  %v294_v21 = vld [vmem:[%s921_s22 + $0x110] sm:$0xff]  ;;  %v325_v22 = vpack.c.bf16 %v263_v20, %v262_v19  ;;  %v295_v23 = vld [vmem:[%s921_s22 + $0x118] sm:$0xff]  ;;  %v281_v25 = vld [vmem:[%s921_s22 + $0xa8] sm:$0xff] }
  0x19   : > { %740 = vmatpush3.bf16.msra.mxu1 %v340_v13  ;;  %713 = vmatprep.subr.bf16.mxu0 %v333_v17  ;;  %v341_v26 = vpack.c.bf16 %v295_v23, %v294_v21  ;;  %v334_v27 = vpack.c.bf16 %v281_v25, %v280_v24  ;;  %v312_v28 = vld [vmem:[%s921_s22 + $0x1a0] sm:$0xff]  ;;  %v313_v29 = vld [vmem:[%s921_s22 + $0x1a8] sm:$0xff]  ;;  %v282_v36 = vld [vmem:[%s921_s22 + $0xb0] sm:$0xff] }
  0x1a   : > { %741 = vmatprep.subr.bf16.mxu1 %v349_v18  ;;  %v264_v30 = vld [vmem:[%s921_s22 + $0x20] sm:$0xff]  ;;  %v350_v31 = vpack.c.bf16 %v313_v29, %v312_v28  ;;  %v265_v32 = vld [vmem:[%s921_s22 + $0x28] sm:$0xff]  ;;  %v283_v37 = vld [vmem:[%s921_s22 + $0xb8] sm:$0xff] }
  0x1b   : > { %v296_v33 = vld [vmem:[%s921_s22 + $0x120] sm:$0xff]  ;;  %v297_v34 = vld [vmem:[%s921_s22 + $0x128] sm:$0xff]  ;;  %v326_v35 = vpack.c.bf16 %v265_v32, %v264_v30  ;;  %v314_v38 = vld [vmem:[%s921_s22 + $0x1b0] sm:$0xff]  ;;  %v335_v40 = vpack.c.bf16 %v283_v37, %v282_v36 }
  0x1c   : > { %714 = vmatpush3.bf16.msra.mxu0 %v325_v22  ;;  %v342_v39 = vpack.c.bf16 %v297_v34, %v296_v33  ;;  %v315_v41 = vld [vmem:[%s921_s22 + $0x1b8] sm:$0xff]  ;;  %v266_v42 = vld [vmem:[%s921_s22 + $0x30] sm:$0xff]  ;;  %v284_v47 = vld [vmem:[%s921_s22 + $0xc0] sm:$0xff] }
  0x1d   : > { %742 = vmatpush3.bf16.msra.mxu1 %v341_v26  ;;  %715 = vmatprep.subr.bf16.mxu0 %v334_v27  ;;  %v267_v43 = vld [vmem:[%s921_s22 + $0x38] sm:$0xff]  ;;  %v351_v44 = vpack.c.bf16 %v315_v41, %v314_v38  ;;  %v298_v45 = vld [vmem:[%s921_s22 + $0x130] sm:$0xff]  ;;  %v285_v48 = vld [vmem:[%s921_s22 + $0xc8] sm:$0xff] }
  0x1e   : > { %743 = vmatprep.subr.bf16.mxu1 %v350_v31  ;;  %v299_v46 = vld [vmem:[%s921_s22 + $0x138] sm:$0xff]  ;;  %v316_v49 = vld [vmem:[%s921_s22 + $0x1c0] sm:$0xff]  ;;  %v317_v50 = vld [vmem:[%s921_s22 + $0x1c8] sm:$0xff]  ;;  %v327_v51 = vpack.c.bf16 %v267_v43, %v266_v42  ;;  %v336_v53 = vpack.c.bf16 %v285_v48, %v284_v47 }
  0x1f   : > { %v343_v52 = vpack.c.bf16 %v299_v46, %v298_v45  ;;  %v268_v54 = vld [vmem:[%s921_s22 + $0x40] sm:$0xff]  ;;  %v269_v55 = vld [vmem:[%s921_s22 + $0x48] sm:$0xff]  ;;  %v352_v57 = vpack.c.bf16 %v317_v50, %v316_v49  ;;  %v286_v59 = vld [vmem:[%s921_s22 + $0xd0] sm:$0xff] }
  0x20   : > { %716 = vmatpush3.bf16.msra.mxu0 %v326_v35  ;;  %v300_v56 = vld [vmem:[%s921_s22 + $0x140] sm:$0xff]  ;;  %v301_v58 = vld [vmem:[%s921_s22 + $0x148] sm:$0xff]  ;;  %v287_v60 = vld [vmem:[%s921_s22 + $0xd8] sm:$0xff]  ;;  %v328_v63 = vpack.c.bf16 %v269_v55, %v268_v54 }
  0x21   : > { %744 = vmatpush3.bf16.msra.mxu1 %v342_v39  ;;  %717 = vmatprep.subr.bf16.mxu0 %v335_v40  ;;  %v318_v61 = vld [vmem:[%s921_s22 + $0x1d0] sm:$0xff]  ;;  %v319_v62 = vld [vmem:[%s921_s22 + $0x1d8] sm:$0xff]  ;;  %v344_v1 = vpack.c.bf16 %v301_v58, %v300_v56  ;;  %v337_v2 = vpack.c.bf16 %v287_v60, %v286_v59  ;;  %v288_v7 = vld [vmem:[%s921_s22 + $0xe0] sm:$0xff] }
  0x22   : > { %745 = vmatprep.subr.bf16.mxu1 %v351_v44  ;;  %v270_v0 = vld [vmem:[%s921_s22 + $0x50] sm:$0xff]  ;;  %v271_v3 = vld [vmem:[%s921_s22 + $0x58] sm:$0xff]  ;;  %v353_v6 = vpack.c.bf16 %v319_v62, %v318_v61  ;;  %v289_v8 = vld [vmem:[%s921_s22 + $0xe8] sm:$0xff] }
  0x23   : > { %v302_v4 = vld [vmem:[%s921_s22 + $0x150] sm:$0xff]  ;;  %v303_v5 = vld [vmem:[%s921_s22 + $0x158] sm:$0xff]  ;;  %v320_v9 = vld [vmem:[%s921_s22 + $0x1e0] sm:$0xff]  ;;  %v329_v13 = vpack.c.bf16 %v271_v3, %v270_v0  ;;  %v338_v18 = vpack.c.bf16 %v289_v8, %v288_v7 }
  0x24   : > { %718 = vmatpush3.bf16.msra.mxu0 %v327_v51  ;;  %v321_v10 = vld [vmem:[%s921_s22 + $0x1e8] sm:$0xff]  ;;  %v272_v11 = vld [vmem:[%s921_s22 + $0x60] sm:$0xff]  ;;  %v290_v16 = vld [vmem:[%s921_s22 + $0xf0] sm:$0xff]  ;;  %v345_v17 = vpack.c.bf16 %v303_v5, %v302_v4 }
  0x25   : > { %746 = vmatpush3.bf16.msra.mxu1 %v343_v52  ;;  %719 = vmatprep.subr.bf16.mxu0 %v336_v53  ;;  %v273_v12 = vld [vmem:[%s921_s22 + $0x68] sm:$0xff]  ;;  %v304_v14 = vld [vmem:[%s921_s22 + $0x160] sm:$0xff]  ;;  %v291_v19 = vld [vmem:[%s921_s22 + $0xf8] sm:$0xff]  ;;  %v354_v20 = vpack.c.bf16 %v321_v10, %v320_v9 }
  0x26   : > { %747 = vmatprep.subr.bf16.mxu1 %v352_v57  ;;  %v305_v15 = vld [vmem:[%s921_s22 + $0x168] sm:$0xff]  ;;  %v322_v21 = vld [vmem:[%s921_s22 + $0x1f0] sm:$0xff]  ;;  %v323_v23 = vld [vmem:[%s921_s22 + $0x1f8] sm:$0xff]  ;;  %v330_v25 = vpack.c.bf16 %v273_v12, %v272_v11  ;;  %v339_v28 = vpack.c.bf16 %v291_v19, %v290_v16 }
  0x27   : > { %v812_v22 = vld [vmem:[%s987_s26 + $0x4] ss:$16 sps:$4 sm:$0xff]   ;;  %v815_v24 = vld [vmem:[%s987_s26 + $0xc] ss:$16 sps:$4 sm:$0xff]   ;;  %v346_v27 = vpack.c.bf16 %v305_v15, %v304_v14  ;;  %v355_v30 = vpack.c.bf16 %v323_v23, %v322_v21  ;;  %v810_v39 = vld [vmem:[%s987_s26] ss:$16 sps:$4 sm:$0xff]  }
  0x28   : > { %720 = vmatpush3.bf16.msra.mxu0 %v328_v63  ;;  %v274_v26 = vld [vmem:[%s921_s22 + $0x70] sm:$0xff]  ;;  %460 = vmatprep.mubr.bf16.mxu0 %v812_v22  ;;  %v275_v29 = vld [vmem:[%s921_s22 + $0x78] sm:$0xff]  ;;  %v364_v33 = vld [vmem:[%s246_s30] sm:$0xff] }
  0x29   : > { %748 = vmatpush3.bf16.msra.mxu1 %v344_v1  ;;  %721 = vmatprep.subr.bf16.mxu0 %v337_v2  ;;  %v306_v31 = vld [vmem:[%s921_s22 + $0x170] sm:$0xff]  ;;  %v307_v32 = vld [vmem:[%s921_s22 + $0x178] sm:$0xff]  ;;  %v331_v35 = vpack.c.bf16 %v275_v29, %v274_v26  ;;  %v365_v36 = vld [vmem:[%s246_s30 + $0x8] sm:$0xff] }
  0x2a   : > { %749 = vmatprep.subr.bf16.mxu1 %v353_v6  ;;  %509 = vmatprep.mubr.bf16.mxu1 %v815_v24  ;;  %v366_v34 = vld [vmem:[%s246_s30 + $0x10] sm:$0xff]  ;;  %v347_v37 = vpack.c.bf16 %v307_v32, %v306_v31  ;;  %v367_v38 = vld [vmem:[%s246_s30 + $0x18] sm:$0xff] }
  0x2b   : > { %370 = vperm.xlu0 %808, %v364_v33   ;;  %380 = vperm.xlu1 %809, %v366_v34   ;;  %v813_v40 = vld [vmem:[%s987_s26 + $0x8] ss:$16 sps:$4 sm:$0xff]   ;;  %v816_v41 = vld [vmem:[%s987_s26 + $0x24] ss:$16 sps:$4 sm:$0xff]   ;;  %v818_v42 = vld [vmem:[%s987_s26 + $0x2c] ss:$16 sps:$4 sm:$0xff]  }
  0x2c   : > { %722 = vmatpush3.bf16.msra.mxu0 %v329_v13  ;;  %v820_v43 = vld [vmem:[%s987_s26 + $0x20] ss:$16 sps:$4 sm:$0xff]   ;;  %v821_v44 = vld [vmem:[%s987_s26 + $0x28] ss:$16 sps:$4 sm:$0xff]  }
  0x2d   : > { %750 = vmatpush3.bf16.msra.mxu1 %v345_v17  ;;  %723 = vmatprep.subr.bf16.mxu0 %v338_v18 }
  0x2e   : > { %751 = vmatprep.subr.bf16.mxu1 %v354_v20 }
  0x2f   : > { %375 = vperm.xlu0 %808, %v365_v36   ;;  %385 = vperm.xlu1 %809, %v367_v38  }
  0x30   : > { %724 = vmatpush3.bf16.msra.mxu0 %v330_v25 }
  0x31   : > { %752 = vmatpush3.bf16.msra.mxu1 %v346_v27  ;;  %725 = vmatprep.subr.bf16.mxu0 %v339_v28 }
  0x32   : > { %753 = vmatprep.subr.bf16.mxu1 %v355_v30 }
  0x34   : > { %726 = vmatpush3.bf16.msra.mxu0 %v331_v35 }
  0x35   : > { %754 = vmatpush3.bf16.msra.mxu1 %v347_v37 }
  0x37   : > { %461 = vmatmul.mubr.bf16.vlgmr.msra.gmra.mrb[0].mxu0 %v810_v39 }
  0x38   : > { %510 = vmatmul.mubr.bf16.vlgmr.msra.gmra.mrb[0].mxu1 %v813_v40  ;;  %468 = vmatprep.mubr.bf16.mxu0 %v816_v41 }
  0x39   : > { %517 = vmatprep.mubr.bf16.mxu1 %v818_v42 }
  0x3f   : > { %469 = vmatmul.mubr.bf16.gmra.mrb[4].mxu0 %v820_v43 }
  0x40   : > { %518 = vmatmul.mubr.bf16.gmra.mrb[4].mxu1 %v821_v44 }
  0xaa   : > { %v371_v45 = vpop.permute.xlu0 %370  ;;  %v381_v62 = vpop.permute.xlu1 %380 }
  0xae   : > { %v376_v47 = vpop.permute.xlu0 %375  ;;  %v386_v14 = vpop.permute.xlu1 %385 }
 0x10a   : > { %v727_v46 = vpop.f32.mrb[0].mxu0 }
 0x10b   : > { %v755_v48 = vpop.f32.mrb[0].mxu1  ;;  %v728_v49 = vpop.f32.mrb[1].mxu0 }
 0x10c   : > { %v729_v50 = vadd.f32 %v728_v49, %v727_v46  ;;  %v756_v51 = vpop.f32.mrb[1].mxu1  ;;  %v730_v52 = vpop.f32.mrb[2].mxu0 }
 0x10d   : > { %v757_v53 = vadd.f32 %v756_v51, %v755_v48  ;;  %v758_v54 = vpop.f32.mrb[2].mxu1  ;;  %v731_v55 = vpop.f32.mrb[3].mxu0 }
 0x10e   : > { %v463_v56 = vadd.f32 %v729_v50, %v371_v45  ;;  %v732_v57 = vadd.f32 %v731_v55, %v730_v52  ;;  %v759_v58 = vpop.f32.mrb[3].mxu1 }
 0x10f   : > { %v760_v59 = vadd.f32 %v759_v58, %v758_v54 }
 0x110   : > { %v512_v60 = vadd.f32 %v757_v53, %v463_v56  ;;  %v466_v61 = vadd.f32 %v732_v57, %v376_v47 }
 0x112   : > { %v707_v63 = vpack.c.bf16 %v512_v60, %v512_v60  ;;  %v515_v0 = vadd.f32 %v760_v59, %v466_v61  ;;  %v733_v1 = vpop.f32.mrb[4].mxu0 }
 0x113   : > { %v761_v2 = vpop.f32.mrb[4].mxu1  ;;  %v734_v3 = vpop.f32.mrb[5].mxu0 }
 0x114   : > { %543 = vst.msk [vmem:[%s258_s10] sm:$0xf] %vm542_vm0, %v707_v63  ;;  %v708_v4 = vpack.c.bf16 %v515_v0, %v515_v0  ;;  %v735_v5 = vadd.f32 %v734_v3, %v733_v1  ;;  %v762_v6 = vpop.f32.mrb[5].mxu1  ;;  %v736_v7 = vpop.f32.mrb[6].mxu0 }
 0x115   : > { %v763_v8 = vadd.f32 %v762_v6, %v761_v2  ;;  %v764_v9 = vpop.f32.mrb[6].mxu1  ;;  %v737_v10 = vpop.f32.mrb[7].mxu0 }
 0x116   : > { %544 = vst.msk [vmem:[%s258_s10 + $0x4] sm:$0xf] %vm542_vm0, %v708_v4  ;;  %v471_v11 = vadd.f32 %v735_v5, %v381_v62  ;;  %v738_v12 = vadd.f32 %v737_v10, %v736_v7  ;;  %v765_v13 = vpop.f32.mrb[7].mxu1 }
 0x117   : > { %v766_v15 = vadd.f32 %v765_v13, %v764_v9 }
 0x118   : > { %v520_v16 = vadd.f32 %v763_v8, %v471_v11  ;;  %v474_v17 = vadd.f32 %v738_v12, %v386_v14 }
 0x11a   : > { %v709_v18 = vpack.c.bf16 %v520_v16, %v520_v16  ;;  %v523_v19 = vadd.f32 %v766_v15, %v474_v17 }
 0x11c   : > { %545 = vst.msk [vmem:[%s258_s10 + $0x8] sm:$0xf] %vm542_vm0, %v709_v18  ;;  %v710_v20 = vpack.c.bf16 %v523_v19, %v523_v19 }
 0x11e   : > { %546 = vst.msk [vmem:[%s258_s10 + $0xc] sm:$0xf] %vm542_vm0, %v710_v20 }
 0x11f PF: > { %s13_s16 = sadd.s32 1, %s860_s16   ;;  %s1039_s12 = smov %s852_s14 }
 0x120   : > { %p10_p7 = scmp.ge.s32.totalorder %s13_s16, 6   ;;  %s1040_s13 = smov %s856_s15 }
 0x121   : > { %s1041_s14 = smov %s1044_s17  ;;  %s1042_s15 = smov %s1048_s18 }
 0x122   :  { %12 = sbr.rel (!%p10_p7) target bundleno = 3 (0x3), region = 68 }

// kernel: scene_encoded_transformer.4
= control target key start
LH: loop header
LB: loop body
LE: loop exit
PB: predicated region body
PF: predicated region fallthrough
CT: control target
= control target key end

     0   :  { %v1413_v0 = vmov 0.0   ;;  %vm1414_vm0 = vmmov 0   ;;  %vm75_vm1 = vcmask 261120   ;;  %vm138_vm2 = vcmask 130048   ;;  %s1417_s29 = smov 16   ;;  %s1420_s22 = smov 64   ;;  %s1677_s2 = inlined_call_operand.vmem [shape: bf16[32,32], index: 2, kind: input, shape index: {}]   ;;  %s1678_s0 = inlined_call_operand.vmem [shape: f32[2,4,32], index: 0, kind: input, shape index: {}]   ;;  %s1679_s1 = inlined_call_operand.vmem [shape: bf16[2,2,32,64], index: 1, kind: input, shape index: {}]   ;;  %s1680_s3 = inlined_call_operand.vmem [shape: f32[1,32], index: 3, kind: input, shape index: {}]   ;;  %s1681_s6 = inlined_call_operand.vmem [shape: f32[32,32], index: 6, kind: input, shape index: {}]   ;;  %s1682_s7 = inlined_call_operand.vmem [shape: bf16[32,32], index: 7, kind: input, shape index: {}]   ;;  %s1683_s4 = inlined_call_operand.vmem [shape: f32[1,32], index: 4, kind: input, shape index: {}]   ;;  %s1684_s5 = inlined_call_operand.vmem [shape: f32[1,32], index: 5, kind: input, shape index: {}]   ;;  %s1685_s9 = inlined_call_operand.vmem [shape: bf16[32,32], index: 9, kind: input, shape index: {}]   ;;  %s1686_s8 = inlined_call_operand.vmem [shape: f32[1,32], index: 8, kind: input, shape index: {}]   ;;  %s1687_s10 = inlined_call_operand.vmem [shape: f32[1,32], index: 10, kind: input, shape index: {}]   ;;  %s1688_s11 = inlined_call_operand.vmem [shape: f32[1,32], index: 11, kind: input, shape index: {}]   ;;  %s1689_s12 = inlined_call_operand.vmem [shape: f32[1,32], index: 12, kind: input, shape index: {}]   ;;  %s1690_s13 = inlined_call_operand.vmem [shape: f32[2,128], index: 13, kind: output, shape index: {}]  }
   0x1   :  { %1234 = vmatprep.subr.bf16.mxu0 %v1413_v0  ;;  %v1382_v1 = vld [vmem:[%s1677_s2] sm:$0xff]   ;;  %1238 = vmatprep.mubr.msk.bf16.mxu0 %vm1414_vm0, %v1413_v0  ;;  %v1383_v2 = vld [vmem:[%s1677_s2 + $0x8] sm:$0xff]   ;;  %v1386_v11 = vld [vmem:[%s1679_s1 + $0x10] sm:$0xff]   ;;  %vm231_vm3 = vcmask 519168   ;;  %vm256_vm4 = vcmask 523264   ;;  %vm1109_vm5 = vcmask 1041409  }
   0x2   :  { %1242 = vmatprep.subr.bf16.mxu1 %v1413_v0  ;;  %1244 = vmatprep.mubr.msk.bf16.mxu1 %vm1414_vm0, %v1413_v0  ;;  %v1384_v3 = vld [vmem:[%s1678_s0] sm:$0xff]   ;;  %v307_v37 = vsel %vm256_vm4, %v1386_v11, 0  ;;  %v1387_v42 = vld [vmem:[%s1679_s1 + $0x8] sm:$0xff]   ;;  %v1388_v46 = vld [vmem:[%s1679_s1 + $0x18] sm:$0xff]   ;;  %vm1150_vm6 = vcmask 785408  }
   0x3   :  { %1235 = vmatpush3.bf16.msra.mxu0 %v1382_v1  ;;  %v51_v4 = vpack.c.bf16 %v1384_v3, %v1384_v3  ;;  %v1385_v5 = vld [vmem:[%s1679_s1] sm:$0xff]  }
   0x4   :  { %1236 = vmatprep.subr.bf16.mxu0 %v1413_v0  ;;  %1243 = vmatpush3.bf16.msra.mxu1 %v1385_v5  ;;  %v1157_v6 = vld [vmem:[%s1680_s3] ss:$0 sm:$0xff]  ;;  %s1415_s3 = smov 112   ;;  %v261_v36 = vsel %vm256_vm4, %v1385_v5, 0 }
   0x5   :  { %1248 = vmatprep.subr.bf16.mxu1 %v1413_v0 }
   0x7   :  { %1237 = vmatpush3.bf16.msra.mxu0 %v1383_v2 }
   0x8   :  { %1254 = vmatprep.subr.bf16.mxu0 %v1413_v0 }
   0xa   :  { %1239 = vmatmul.mubr.msk.bf16.vlgmr.msra.gmra.mrb[0].mxu0 %vm75_vm1, %v51_v4 }
   0xb   :  { %1256 = vmatprep.mubr.msk.bf16.mxu0 %vm1414_vm0, %v1413_v0 }
  0x10   :  { %1255 = vmatpush3.bf16.xpose.msra.mxu0 %v261_v36 }
  0x11   :  { %1266 = vmatprep.subr.bf16.mxu0 %v1413_v0 }
  0xdd   :  { %v113_v7 = vpop.f32.mrb[0].mxu0 }
  0xde   :  { %v1518_v8 = vadd.f32 %v1157_v6, %v113_v7  ;;  %v1240_v9 = vpop.f32.mrb[1].mxu0 }
  0xdf   :  { %v116_v10 = vpop.f32.mrb[2].mxu0 }
  0xe0   :  { %v130_v12 = vpack.c.bf16 %v1518_v8, %v1518_v8  ;;  %v1241_v13 = vpop.f32.mrb[3].mxu0  ;;  %v1530_v14 = vcombine.high %v1518_v8, %v1518_v8 }
  0xe2   :  { %1245 = vmatmul.mubr.msk.bf16.vlgmr.msra.gmra.mrb[0].mxu1 %vm138_vm2, %v130_v12  ;;  %v131_v15 = vpack.c.bf16 %v1530_v14, %v1530_v14 }
  0xe3   :  { %1249 = vmatpush3.bf16.msra.mxu1 %v1386_v11  ;;  %1250 = vmatprep.mubr.msk.bf16.mxu1 %vm1414_vm0, %v1413_v0 }
  0xe4   :  { %1260 = vmatprep.subr.bf16.mxu1 %v1413_v0 }
  0xea   :  { %1251 = vmatmul.mubr.msk.bf16.vlgmr.msra.gmra.mrb[4].mxu1 %vm138_vm2, %v131_v15 }
  0xeb   :  { %1262 = vmatprep.mubr.msk.bf16.mxu1 %vm1414_vm0, %v1413_v0 }
  0xec   :  { %1261 = vmatpush3.bf16.xpose.msra.mxu1 %v307_v37 }
  0xed   :  { %1272 = vmatprep.subr.bf16.mxu1 %v1413_v0 }
 0x1b5   :  { %v176_v16 = vpop.f32.mrb[0].mxu1 }
 0x1b6   :  { %v1246_v17 = vpop.f32.mrb[1].mxu1  ;;  %v232_v18 = vsel %vm231_vm3, %v176_v16, -inf }
 0x1b7   :  { %233 = vmax.xlane.f32.xlu0 %v232_v18  ;;  %v179_v19 = vpop.f32.mrb[2].mxu1  ;;  %v481_v17 = vsel %vm256_vm4, %v1387_v42, 0  ;;  %v527_v18 = vsel %vm256_vm4, %v1388_v46, 0 }
 0x1b8   :  { %v1247_v20 = vpop.f32.mrb[3].mxu1 }
 0x1bd   :  { %v225_v21 = vpop.f32.mrb[4].mxu1 }
 0x1be   :  { %v1252_v22 = vpop.f32.mrb[5].mxu1  ;;  %v235_v23 = vsel %vm231_vm3, %v225_v21, -inf }
 0x1bf   :  { %236 = vmax.xlane.f32.xlu0 %v235_v23  ;;  %v228_v24 = vpop.f32.mrb[6].mxu1 }
 0x1c0   :  { %v1253_v25 = vpop.f32.mrb[7].mxu1 }
 0x1d5   :  { %350 = vrot.lane.b32.xlu0 %v130_v12, %s1415_s3 }
 0x244   :  { %v234_v26 = vpop.xlane.xlu0 %233 }
 0x245   :  { %v238_v27 = vsub.f32 %v176_v16, %v234_v26 }
 0x247   :  { %v240_v28 = vmul.f32 1.442695, %v238_v27  ;;  %v1416_v27 = vmov 0.0|0.0  }
 0x249   :  { %1393 = vpow2.f32 %v240_v28  ;;  %v579_v28 = vld [vmem:[%s1681_s6] sm:$0xff] }
 0x24c   :  { %v237_v29 = vpop.xlane.xlu0 %236 }
 0x24d   :  { %v239_v30 = vsub.f32 %v225_v21, %v237_v29  ;;  %v580_v29 = vld [vmem:[%s1681_s6 + $0x8] sm:$0xff] }
 0x24f   :  { %v242_v31 = vmul.f32 1.442695, %v239_v30  ;;  %v1590_v30 = vpack.c.bf16 %v580_v29, %v579_v28 }
 0x250   :  { %v351_v48 = vpop.permute.xlu0 %350 }
 0x251   :  { %1395 = vpow2.f32 %v242_v31  ;;  %v581_v31 = vld [vmem:[%s1681_s6 + $0x10] sm:$0xff] }
 0x253   :  { %v1394_v32 = vpop.eup %1393 }
 0x254   :  { %v244_v33 = vsel %vm231_vm3, %v1394_v32, 0.0 }
 0x255   :  { %245 = vadd.xlane.f32.xlu1 %v244_v33 }
 0x25b   :  { %v1396_v34 = vpop.eup %1395 }
 0x25c   :  { %v247_v35 = vsel %vm231_vm3, %v1396_v34, 0.0 }
 0x25d   :  { %248 = vadd.xlane.f32.xlu1 %v247_v35 }
 0x26e   :  { %402 = vrot.lane.b32.xlu1 %v131_v15, %s1415_s3 }
 0x2e2   :  { %v246_v38 = vpop.xlane.xlu1 %245 }
 0x2e3   :  { %1397 = vrcp.f32 %v246_v38 }
 0x2ea   :  { %v249_v39 = vpop.xlane.xlu1 %248 }
 0x2eb   :  { %1399 = vrcp.f32 %v249_v39 }
 0x2ed   :  { %v1398_v40 = vpop.eup %1397 }
 0x2ee   :  { %v252_v41 = vmul.f32 %v1398_v40, %v1394_v32  ;;  %v403_v49 = vpop.permute.xlu1 %402  ;;  %v582_v32 = vld [vmem:[%s1681_s6 + $0x18] sm:$0xff] }
 0x2ef   :  { %v1602_v33 = vpack.c.bf16 %v582_v32, %v581_v31 }
 0x2f0   :  { %v254_v43 = vpack.c.bf16 %v252_v41, %v252_v41 }
 0x2f2   :  { %1257 = vmatmul.mubr.msk.bf16.vlgmr.msra.gmra.mrb[4].mxu0 %vm256_vm4, %v254_v43 }
 0x2f3   :  { %1267 = vmatpush3.bf16.msra.mxu0 %v1387_v42  ;;  %1268 = vmatprep.mubr.msk.bf16.mxu0 %vm1414_vm0, %v1413_v0 }
 0x2f4   :  { %1278 = vmatprep.subr.bf16.mxu0 %v1413_v0 }
 0x2f5   :  { %v1400_v44 = vpop.eup %1399 }
 0x2f6   :  { %v253_v45 = vmul.f32 %v1400_v44, %v1396_v34 }
 0x2f8   :  { %v255_v47 = vpack.c.bf16 %v253_v45, %v253_v45 }
 0x2fa   :  { %1263 = vmatmul.mubr.msk.bf16.vlgmr.msra.gmra.mrb[8].mxu1 %vm256_vm4, %v255_v47  ;;  %1269 = vmatmul.mubr.msk.bf16.vlgmr.msra.gmra.mrb[8].mxu0 %vm138_vm2, %v351_v48 }
 0x2fb   :  { %1273 = vmatpush3.bf16.msra.mxu1 %v1388_v46  ;;  %1274 = vmatprep.mubr.msk.bf16.mxu1 %vm1414_vm0, %v1413_v0 }
 0x2fc   :  { %1280 = vmatprep.mubr.msk.bf16.mxu0 %vm1414_vm0, %v1413_v0  ;;  %1284 = vmatprep.subr.bf16.mxu1 %v1413_v0 }
 0x2fd   :  { %1279 = vmatpush3.bf16.xpose.msra.mxu0 %v481_v17 }
 0x2fe   :  { %1350 = vmatprep.subr.bf16.mxu0 %v1416_v27 }
 0x302   :  { %1275 = vmatmul.mubr.msk.bf16.vlgmr.msra.gmra.mrb[12].mxu1 %vm138_vm2, %v403_v49 }
 0x303   :  { %1286 = vmatprep.mubr.msk.bf16.mxu1 %vm1414_vm0, %v1413_v0 }
 0x304   :  { %1285 = vmatpush3.bf16.xpose.msra.mxu1 %v527_v18 }
 0x305   :  { %1356 = vmatprep.subr.bf16.mxu1 %v1416_v27 }
 0x3c5   :  { %v1566_v50 = vpop.f32.mrb[4].mxu0 }
 0x3c6   :  { %v1258_v51 = vpop.f32.mrb[5].mxu0 }
 0x3c7   :  { %v300_v52 = vpop.f32.mrb[6].mxu0 }
 0x3c8   :  { %v1259_v53 = vpop.f32.mrb[7].mxu0 }
 0x3cd   :  { %v1568_v54 = vpop.f32.mrb[8].mxu1  ;;  %v395_v55 = vpop.f32.mrb[8].mxu0 }
 0x3ce   :  { %v1264_v56 = vpop.f32.mrb[9].mxu1  ;;  %v1270_v57 = vpop.f32.mrb[9].mxu0  ;;  %v453_v58 = vsel %vm231_vm3, %v395_v55, -inf }
 0x3cf   :  { %v346_v59 = vpop.f32.mrb[10].mxu1  ;;  %454 = vmax.xlane.f32.xlu1 %v453_v58  ;;  %v398_v60 = vpop.f32.mrb[10].mxu0 }
 0x3d0   :  { %v1265_v61 = vpop.f32.mrb[11].mxu1  ;;  %v1271_v62 = vpop.f32.mrb[11].mxu0  ;;  %v1175_v60 = vld [vmem:[%s1683_s4] ss:$0 sm:$0xff] }
 0x3d1   :  { %v1176_v62 = vld [vmem:[%s1684_s5] ss:$0 sm:$0xff] }
 0x3d5   :  { %v447_v63 = vpop.f32.mrb[12].mxu1 }
 0x3d6   :  { %v1276_v1 = vpop.f32.mrb[13].mxu1  ;;  %v456_v2 = vsel %vm231_vm3, %v447_v63, -inf }
 0x3d7   :  { %457 = vmax.xlane.f32.xlu0 %v456_v2  ;;  %v450_v3 = vpop.f32.mrb[14].mxu1  ;;  %v756_v2 = vcombine.high %v1175_v60, %v1175_v60 }
 0x3d8   :  { %v1277_v4 = vpop.f32.mrb[15].mxu1 }
 0x45c   :  { %v455_v5 = vpop.xlane.xlu1 %454 }
 0x45d   :  { %v459_v6 = vsub.f32 %v395_v55, %v455_v5  ;;  %v766_v5 = vcombine.high %v1176_v62, %v1176_v62 }
 0x45f   :  { %v461_v7 = vmul.f32 1.442695, %v459_v6 }
 0x461   :  { %1401 = vpow2.f32 %v461_v7 }
 0x464   :  { %v458_v9 = vpop.xlane.xlu0 %457 }
 0x465   :  { %v460_v10 = vsub.f32 %v447_v63, %v458_v9 }
 0x467   :  { %v463_v11 = vmul.f32 1.442695, %v460_v10 }
 0x469   :  { %1403 = vpow2.f32 %v463_v11 }
 0x46b   :  { %v1402_v12 = vpop.eup %1401 }
 0x46c   :  { %v465_v13 = vsel %vm231_vm3, %v1402_v12, 0.0 }
 0x46d   :  { %466 = vadd.xlane.f32.xlu0 %v465_v13  ;;  %v1392_v13 = vld [vmem:[%s1685_s9 + $0x8] sm:$0xff]  }
 0x473   :  { %v1404_v15 = vpop.eup %1403 }
 0x474   :  { %v468_v16 = vsel %vm231_vm3, %v1404_v15, 0.0 }
 0x475   :  { %469 = vadd.xlane.f32.xlu1 %v468_v16 }
 0x4fa   :  { %v467_v19 = vpop.xlane.xlu0 %466 }
 0x4fb   :  { %1405 = vrcp.f32 %v467_v19 }
 0x502   :  { %v470_v20 = vpop.xlane.xlu1 %469 }
 0x503   :  { %1407 = vrcp.f32 %v470_v20 }
 0x505   :  { %v1406_v21 = vpop.eup %1405 }
 0x506   :  { %v473_v22 = vmul.f32 %v1406_v21, %v1402_v12  ;;  %v1391_v12 = vld [vmem:[%s1685_s9] sm:$0xff]  }
 0x508   :  { %v475_v23 = vpack.c.bf16 %v473_v22, %v473_v22 }
 0x50a   :  { %1281 = vmatmul.mubr.msk.bf16.vlgmr.msra.gmra.mrb[12].mxu0 %vm256_vm4, %v475_v23  ;;  %v1181_v23 = vld [vmem:[%s1687_s10] ss:$0 sm:$0xff] }
 0x50b   :  { %1298 = vmatprep.mubr.msk.f32.mxu0 %vm1414_vm0, %v1413_v0  ;;  %1352 = vmatpush3.bf16.msra.mxu0 %v1590_v30 }
 0x50c   :  { %1353 = vmatprep.subr.bf16.mxu0 %v1416_v27 }
 0x50d   :  { %v1408_v24 = vpop.eup %1407 }
 0x50e   :  { %v474_v25 = vmul.f32 %v1408_v24, %v1404_v15  ;;  %v1177_v15 = vld [vmem:[%s1686_s8] ss:$0 sm:$0xff] }
 0x50f   :  { %1355 = vmatpush3.bf16.msra.mxu0 %v1602_v33 }
 0x510   :  { %v476_v26 = vpack.c.bf16 %v474_v25, %v474_v25  ;;  %1312 = vmatprep.subr.bf16.mxu0 %v1413_v0 }
 0x512   :  { %1287 = vmatmul.mubr.msk.bf16.vlgmr.msra.gmra.mrb[16].mxu1 %vm256_vm4, %v476_v26 }
 0x513   :  { %1309 = vmatprep.mubr.msk.f32.mxu1 %vm1414_vm0, %v1413_v0  ;;  %1358 = vmatpush3.bf16.msra.mxu1 %v1590_v30 }
 0x514   :  { %1359 = vmatprep.subr.bf16.mxu1 %v1416_v27 }
 0x517   :  { %1361 = vmatpush3.bf16.msra.mxu1 %v1602_v33 }
 0x518   :  { %1320 = vmatprep.subr.bf16.mxu1 %v1413_v0 }
 0x5dd   :  { %v517_v34 = vpop.f32.mrb[12].mxu0 }
 0x5de   :  { %571 = vrot.lane.b32.xlu0 %v517_v34, %s1417_s29  ;;  %v1282_v35 = vpop.f32.mrb[13].mxu0 }
 0x5df   :  { %v520_v36 = vpop.f32.mrb[14].mxu0 }
 0x5e0   :  { %v1283_v37 = vpop.f32.mrb[15].mxu0 }
 0x5e5   :  { %v563_v38 = vpop.f32.mrb[16].mxu1 }
 0x5e6   :  { %573 = vrot.lane.b32.xlu1 %v563_v38, %s1417_s29  ;;  %v1288_v39 = vpop.f32.mrb[17].mxu1 }
 0x5e7   :  { %v566_v40 = vpop.f32.mrb[18].mxu1 }
 0x5e8   :  { %v1289_v41 = vpop.f32.mrb[19].mxu1 }
 0x650   :  { %v572_v42 = vpop.permute.xlu0 %571 }
 0x651   :  { %v577_v43 = vsel %vm138_vm2, %v1566_v50, %v572_v42 }
 0x652   :  { %v583_v46 = vadd.f32 %v577_v43, %v1518_v8  ;;  %v1389_v8 = vld [vmem:[%s1682_s7] sm:$0xff]   ;;  %v1101_v43 = vlaneseq }
 0x658   :  { %v574_v44 = vpop.permute.xlu1 %573 }
 0x659   :  { %v578_v45 = vsel %vm138_vm2, %v1568_v54, %v574_v44  ;;  %v1187_v44 = vld [vmem:[%s1688_s11] ss:$0 sm:$0xff]  ;;  %s1418_s11 = smov 96  }
 0x65a   :  { %v584_v47 = vadd.f32 %v578_v45, %v1530_v14  ;;  %v1390_v14 = vld [vmem:[%s1682_s7 + $0x8] sm:$0xff]  }
 0x65c   :  { %v589_v48 = vcombine.low %v583_v46, %v584_v47 }
 0x65e   :  { %1299 = vmatmul.mubr.msk.f32.vlgmr.msra.gmra.mrb[16].mxu0 %vm75_vm1, %v589_v48 }
 0x65f   :  { %1316 = vmatprep.mubr.msk.bf16.mxu0 %vm1414_vm0, %v1413_v0  ;;  %1313 = vmatpush3.bf16.msra.mxu0 %v1389_v8 }
 0x660   :  { %1314 = vmatprep.subr.bf16.mxu0 %v1413_v0 }
 0x663   :  { %1315 = vmatpush3.bf16.msra.mxu0 %v1390_v14 }
 0x664   :  { %1362 = vmatprep.subr.bf16.mxu0 %v1416_v27 }
 0x731   :  { %v658_v49 = vpop.f32.mrb[16].mxu0 }
 0x732   :  { %v663_v51 = vcombine.high %v658_v49, %v658_v49  ;;  %v665_v52 = vsub.f32 %v583_v46, %v658_v49  ;;  %v1300_v53 = vpop.f32.mrb[17].mxu0  ;;  %v1188_v46 = vld [vmem:[%s1689_s12] ss:$0 sm:$0xff]  ;;  %s1419_s12 = smov 32  }
 0x734   :  { %v666_v55 = vsub.f32 %v584_v47, %v663_v51  ;;  %v667_v50 = vmul.f32 %v665_v52, %v665_v52  ;;  %v1102_v47 = vshrl.u32 %v1101_v43, 7  ;;  %v1085_v51 = vcombine.high %v1187_v44, %v1187_v44 }
 0x736   :  { %v668_v56 = vmul.f32 %v666_v55, %v666_v55  ;;  %v1114_v14 = vsub.s32 1, %v1102_v47 }
 0x738   :  { %v671_v57 = vcombine.low %v667_v50, %v668_v56  ;;  %v1138_v50 = vsub.s32 3, %v1102_v47  ;;  %v1103_v56 = vsub.s32 0, %v1102_v47 }
 0x73a   :  { %1310 = vmatmul.mubr.msk.f32.vlgmr.msra.gmra.mrb[20].mxu1 %vm75_vm1, %v671_v57 }
 0x73b   :  { %1324 = vmatprep.mubr.msk.bf16.mxu1 %vm1414_vm0, %v1413_v0  ;;  %1321 = vmatpush3.bf16.msra.mxu1 %v1391_v12 }
 0x73c   :  { %1322 = vmatprep.subr.bf16.mxu1 %v1413_v0 }
 0x73f   :  { %1323 = vmatpush3.bf16.msra.mxu1 %v1392_v13 }
 0x740   :  { %1368 = vmatprep.subr.bf16.mxu1 %v1416_v27 }
 0x80d   :  { %v740_v54 = vpop.f32.mrb[20].mxu1 }
 0x80e   :  { %v741_v58 = vadd.f32 1e-05, %v740_v54  ;;  %v1311_v59 = vpop.f32.mrb[21].mxu1 }
 0x80f   :  { %v1126_v59 = vsub.s32 2, %v1102_v47 }
 0x810   :  { %1409 = vrsqrt.f32 %v741_v58 }
 0x81a   :  { %v1410_v61 = vpop.eup %1409 }
 0x81b   :  { %v746_v63 = vcombine.high %v1410_v61, %v1410_v61  ;;  %v748_v1 = vmul.f32 %v1410_v61, %v665_v52 }
 0x81d   :  { %v749_v3 = vmul.f32 %v746_v63, %v666_v55  ;;  %v758_v4 = vmul.f32 %v1175_v60, %v748_v1  ;;  %v1095_v55 = vcombine.high %v1188_v46, %v1188_v46 }
 0x81f   :  { %v759_v6 = vmul.f32 %v756_v2, %v749_v3  ;;  %v768_v7 = vadd.f32 %v1176_v62, %v758_v4 }
 0x821   :  { %v769_v9 = vadd.f32 %v766_v5, %v759_v6 }
 0x823   :  { %v772_v10 = vcombine.low %v768_v7, %v769_v9 }
 0x825   :  { %v774_v11 = vpack.c.bf16 %v772_v10, %v772_v10 }
 0x827   :  { %1317 = vmatmul.mubr.msk.bf16.vlgmr.msra.gmra.mrb[20].mxu0 %vm75_vm1, %v774_v11 }
 0x828   :  { %1364 = vmatpush3.bf16.msra.mxu0 %v1590_v30  ;;  %1336 = vmatprep.mubr.msk.f32.mxu0 %vm1414_vm0, %v1413_v0 }
 0x829   :  { %1365 = vmatprep.subr.bf16.mxu0 %v1416_v27 }
 0x82c   :  { %1367 = vmatpush3.bf16.msra.mxu0 %v1602_v33 }
 0x8fa   :  { %v835_v16 = vpop.f32.mrb[20].mxu0 }
 0x8fb   :  { %v836_v17 = vadd.f32 %v1177_v15, %v835_v16  ;;  %v1318_v18 = vpop.f32.mrb[21].mxu0 }
 0x8fc   :  { %v838_v19 = vpop.f32.mrb[22].mxu0 }
 0x8fd   :  { %v841_v20 = vmax.f32 %v836_v17, 0.0  ;;  %v1319_v21 = vpop.f32.mrb[23].mxu0 }
 0x8ff   :  { %v842_v22 = vpack.c.bf16 %v841_v20, %v841_v20 }
 0x901   :  { %1325 = vmatmul.mubr.msk.bf16.vlgmr.msra.gmra.mrb[24].mxu1 %vm75_vm1, %v842_v22 }
 0x902   :  { %1370 = vmatpush3.bf16.msra.mxu1 %v1590_v30  ;;  %1347 = vmatprep.mubr.msk.f32.mxu1 %vm1414_vm0, %v1413_v0 }
 0x903   :  { %1371 = vmatprep.subr.bf16.mxu1 %v1416_v27 }
 0x906   :  { %1373 = vmatpush3.bf16.msra.mxu1 %v1602_v33 }
 0x9d4   :  { %v903_v24 = vpop.f32.mrb[24].mxu1 }
 0x9d5   :  { %v904_v25 = vadd.f32 %v1181_v23, %v903_v24  ;;  %v1326_v26 = vpop.f32.mrb[25].mxu1 }
 0x9d6   :  { %v906_v28 = vpop.f32.mrb[26].mxu1 }
 0x9d7   :  { %v910_v29 = vcombine.high %v904_v25, %v904_v25  ;;  %v1327_v31 = vpop.f32.mrb[27].mxu1  ;;  %v912_v32 = vadd.f32 %v904_v25, %v768_v7 }
 0x9d9   :  { %v913_v34 = vadd.f32 %v910_v29, %v769_v9 }
 0x9db   :  { %v918_v30 = vcombine.low %v912_v32, %v913_v34 }
 0x9dd   :  { %1337 = vmatmul.mubr.msk.f32.vlgmr.msra.gmra.mrb[18].mxu0 %vm75_vm1, %v918_v30 }
 0xab0   :  { %v987_v0 = vpop.f32.mrb[18].mxu0 }
 0xab1   :  { %v992_v35 = vcombine.high %v987_v0, %v987_v0  ;;  %v994_v27 = vsub.f32 %v912_v32, %v987_v0  ;;  %v1338_v36 = vpop.f32.mrb[19].mxu0 }
 0xab3   :  { %v995_v33 = vsub.f32 %v913_v34, %v992_v35  ;;  %v996_v37 = vmul.f32 %v994_v27, %v994_v27 }
 0xab5   :  { %v997_v38 = vmul.f32 %v995_v33, %v995_v33 }
 0xab7   :  { %v1000_v39 = vcombine.low %v996_v37, %v997_v38 }
 0xab9   :  { %1348 = vmatmul.mubr.msk.f32.vlgmr.msra.gmra.mrb[22].mxu1 %vm75_vm1, %v1000_v39 }
 0xb8c   :  { %v1069_v40 = vpop.f32.mrb[22].mxu1 }
 0xb8d   :  { %v1070_v41 = vadd.f32 1e-05, %v1069_v40  ;;  %v1349_v42 = vpop.f32.mrb[23].mxu1 }
 0xb8f   :  { %1411 = vrsqrt.f32 %v1070_v41 }
 0xb99   :  { %v1412_v45 = vpop.eup %1411 }
 0xb9a   :  { %v1075_v48 = vcombine.high %v1412_v45, %v1412_v45  ;;  %v1077_v49 = vmul.f32 %v1412_v45, %v994_v27 }
 0xb9c   :  { %v1078_v52 = vmul.f32 %v1075_v48, %v995_v33  ;;  %v1087_v53 = vmul.f32 %v1187_v44, %v1077_v49 }
 0xb9e   :  { %v1088_v57 = vmul.f32 %v1085_v51, %v1078_v52  ;;  %v1097_v8 = vadd.f32 %v1188_v46, %v1087_v53 }
 0xba0   :  { %v1098_v54 = vadd.f32 %v1095_v55, %v1088_v57  ;;  %v1139_v58 = vrot.slane %v1097_v8, %v1138_v50  ;;  %v1104_v60 = vrot.slane %v1097_v8, %v1103_v56  ;;  %v1115_v62 = vrot.slane %v1097_v8, %v1114_v14 }
 0xba1   :  { %v1127_v6 = vrot.slane %v1097_v8, %v1126_v59 }
 0xba2   :  { %v1143_v61 = vrot.slane %v1098_v54, %v1138_v50  ;;  %v1119_v63 = vrot.slane %v1098_v54, %v1114_v14  ;;  %v1108_v1 = vrot.slane %v1098_v54, %v1103_v56  ;;  %v1131_v4 = vrot.slane %v1098_v54, %v1126_v59 }
 0xba4   :  { %v1144_v2 = vsel %vm1109_vm5, %v1143_v61, %v1139_v58  ;;  %v1120_v3 = vsel %vm1109_vm5, %v1119_v63, %v1115_v62  ;;  %v1110_v5 = vsel %vm1109_vm5, %v1108_v1, %v1104_v60  ;;  %v1132_v7 = vsel %vm1109_vm5, %v1131_v4, %v1127_v6 }
 0xba5   :  { %1145 = vrot.lane.b32.xlu0 %v1144_v2, %s1418_s11  ;;  %1121 = vrot.lane.b32.xlu1 %v1120_v3, %s1419_s12 }
 0xba9   :  { %1133 = vrot.lane.b32.xlu1 %v1132_v7, %s1420_s22 }
 0xc17   :  { %v1122_v9 = vpop.permute.xlu1 %1121  ;;  %v1146_v12 = vpop.permute.xlu0 %1145 }
 0xc18   :  { %v1148_v10 = vsel %vm75_vm1, %v1110_v5, %v1122_v9 }
 0xc1b   :  { %v1134_v11 = vpop.permute.xlu1 %1133 }
 0xc1c   :  { %v1149_v13 = vsel %vm256_vm4, %v1148_v10, %v1134_v11 }
 0xc1d   :  { %v1151_v15 = vsel %vm1150_vm6, %v1149_v13, %v1146_v12 }
 0xc1e   :  { %1152 = vst [vmem:[%s1690_s13] sm:$0x3] %v1151_v15 }

// kernel: scene_encoded_transformer.5
= control target key start
LH: loop header
LB: loop body
LE: loop exit
PB: predicated region body
PF: predicated region fallthrough
CT: control target
= control target key end

     0   :  { %v1424_v0 = vmov 0.0   ;;  %vm1425_vm0 = vmmov 0   ;;  %vm78_vm1 = vcmask 261120   ;;  %vm141_vm2 = vcmask 130048   ;;  %s1428_s29 = smov 16   ;;  %s1431_s22 = smov 64   ;;  %s1688_s2 = inlined_call_operand.vmem [shape: bf16[32,32], index: 2, kind: input, shape index: {}]   ;;  %s1689_s0 = inlined_call_operand.vmem [shape: f32[2,4,32], index: 0, kind: input, shape index: {}]   ;;  %s1690_s1 = inlined_call_operand.vmem [shape: bf16[2,2,32,64], index: 1, kind: input, shape index: {}]   ;;  %s1691_s3 = inlined_call_operand.vmem [shape: f32[1,32], index: 3, kind: input, shape index: {}]   ;;  %s1692_s6 = inlined_call_operand.vmem [shape: f32[32,32], index: 6, kind: input, shape index: {}]   ;;  %s1693_s7 = inlined_call_operand.vmem [shape: bf16[32,32], index: 7, kind: input, shape index: {}]   ;;  %s1694_s4 = inlined_call_operand.vmem [shape: f32[1,32], index: 4, kind: input, shape index: {}]   ;;  %s1695_s5 = inlined_call_operand.vmem [shape: f32[1,32], index: 5, kind: input, shape index: {}]   ;;  %s1696_s9 = inlined_call_operand.vmem [shape: bf16[32,32], index: 9, kind: input, shape index: {}]   ;;  %s1697_s8 = inlined_call_operand.vmem [shape: f32[1,32], index: 8, kind: input, shape index: {}]   ;;  %s1698_s10 = inlined_call_operand.vmem [shape: f32[1,32], index: 10, kind: input, shape index: {}]   ;;  %s1699_s11 = inlined_call_operand.vmem [shape: f32[1,32], index: 11, kind: input, shape index: {}]   ;;  %s1700_s12 = inlined_call_operand.vmem [shape: f32[1,32], index: 12, kind: input, shape index: {}]   ;;  %s1701_s13 = inlined_call_operand.vmem [shape: f32[2,128], index: 13, kind: output, shape index: {}]  }
   0x1   :  { %1245 = vmatprep.subr.bf16.mxu0 %v1424_v0  ;;  %v1393_v1 = vld [vmem:[%s1688_s2] sm:$0xff]   ;;  %1249 = vmatprep.mubr.msk.bf16.mxu0 %vm1425_vm0, %v1424_v0  ;;  %v1394_v2 = vld [vmem:[%s1688_s2 + $0x8] sm:$0xff]   ;;  %v1397_v11 = vld [vmem:[%s1690_s1 + $0x30] sm:$0xff]   ;;  %vm234_vm3 = vcmask 519168   ;;  %vm259_vm4 = vcmask 523264   ;;  %vm1112_vm5 = vcmask 1041409  }
   0x2   :  { %1253 = vmatprep.subr.bf16.mxu1 %v1424_v0  ;;  %1255 = vmatprep.mubr.msk.bf16.mxu1 %vm1425_vm0, %v1424_v0  ;;  %v1395_v3 = vld [vmem:[%s1689_s0] sm:$0xff]   ;;  %v310_v37 = vsel %vm259_vm4, %v1397_v11, 0  ;;  %v1398_v42 = vld [vmem:[%s1690_s1 + $0x28] sm:$0xff]   ;;  %v1399_v46 = vld [vmem:[%s1690_s1 + $0x38] sm:$0xff]   ;;  %vm1153_vm6 = vcmask 785408  }
   0x3   :  { %1246 = vmatpush3.bf16.msra.mxu0 %v1393_v1  ;;  %v54_v4 = vpack.c.bf16 %v1395_v3, %v1395_v3  ;;  %v1396_v5 = vld [vmem:[%s1690_s1 + $0x20] sm:$0xff]  }
   0x4   :  { %1247 = vmatprep.subr.bf16.mxu0 %v1424_v0  ;;  %1254 = vmatpush3.bf16.msra.mxu1 %v1396_v5  ;;  %v1160_v6 = vld [vmem:[%s1691_s3] ss:$0 sm:$0xff]  ;;  %s1426_s3 = smov 112   ;;  %v264_v36 = vsel %vm259_vm4, %v1396_v5, 0 }
   0x5   :  { %1259 = vmatprep.subr.bf16.mxu1 %v1424_v0 }
   0x7   :  { %1248 = vmatpush3.bf16.msra.mxu0 %v1394_v2 }
   0x8   :  { %1265 = vmatprep.subr.bf16.mxu0 %v1424_v0 }
   0xa   :  { %1250 = vmatmul.mubr.msk.bf16.vlgmr.msra.gmra.mrb[0].mxu0 %vm78_vm1, %v54_v4 }
   0xb   :  { %1267 = vmatprep.mubr.msk.bf16.mxu0 %vm1425_vm0, %v1424_v0 }
  0x10   :  { %1266 = vmatpush3.bf16.xpose.msra.mxu0 %v264_v36 }
  0x11   :  { %1277 = vmatprep.subr.bf16.mxu0 %v1424_v0 }
  0xdd   :  { %v116_v7 = vpop.f32.mrb[0].mxu0 }
  0xde   :  { %v1529_v8 = vadd.f32 %v1160_v6, %v116_v7  ;;  %v1251_v9 = vpop.f32.mrb[1].mxu0 }
  0xdf   :  { %v119_v10 = vpop.f32.mrb[2].mxu0 }
  0xe0   :  { %v133_v12 = vpack.c.bf16 %v1529_v8, %v1529_v8  ;;  %v1252_v13 = vpop.f32.mrb[3].mxu0  ;;  %v1541_v14 = vcombine.high %v1529_v8, %v1529_v8 }
  0xe2   :  { %1256 = vmatmul.mubr.msk.bf16.vlgmr.msra.gmra.mrb[0].mxu1 %vm141_vm2, %v133_v12  ;;  %v134_v15 = vpack.c.bf16 %v1541_v14, %v1541_v14 }
  0xe3   :  { %1260 = vmatpush3.bf16.msra.mxu1 %v1397_v11  ;;  %1261 = vmatprep.mubr.msk.bf16.mxu1 %vm1425_vm0, %v1424_v0 }
  0xe4   :  { %1271 = vmatprep.subr.bf16.mxu1 %v1424_v0 }
  0xea   :  { %1262 = vmatmul.mubr.msk.bf16.vlgmr.msra.gmra.mrb[4].mxu1 %vm141_vm2, %v134_v15 }
  0xeb   :  { %1273 = vmatprep.mubr.msk.bf16.mxu1 %vm1425_vm0, %v1424_v0 }
  0xec   :  { %1272 = vmatpush3.bf16.xpose.msra.mxu1 %v310_v37 }
  0xed   :  { %1283 = vmatprep.subr.bf16.mxu1 %v1424_v0 }
 0x1b5   :  { %v179_v16 = vpop.f32.mrb[0].mxu1 }
 0x1b6   :  { %v1257_v17 = vpop.f32.mrb[1].mxu1  ;;  %v235_v18 = vsel %vm234_vm3, %v179_v16, -inf }
 0x1b7   :  { %236 = vmax.xlane.f32.xlu0 %v235_v18  ;;  %v182_v19 = vpop.f32.mrb[2].mxu1  ;;  %v484_v17 = vsel %vm259_vm4, %v1398_v42, 0  ;;  %v530_v18 = vsel %vm259_vm4, %v1399_v46, 0 }
 0x1b8   :  { %v1258_v20 = vpop.f32.mrb[3].mxu1 }
 0x1bd   :  { %v228_v21 = vpop.f32.mrb[4].mxu1 }
 0x1be   :  { %v1263_v22 = vpop.f32.mrb[5].mxu1  ;;  %v238_v23 = vsel %vm234_vm3, %v228_v21, -inf }
 0x1bf   :  { %239 = vmax.xlane.f32.xlu0 %v238_v23  ;;  %v231_v24 = vpop.f32.mrb[6].mxu1 }
 0x1c0   :  { %v1264_v25 = vpop.f32.mrb[7].mxu1 }
 0x1d5   :  { %353 = vrot.lane.b32.xlu0 %v133_v12, %s1426_s3 }
 0x244   :  { %v237_v26 = vpop.xlane.xlu0 %236 }
 0x245   :  { %v241_v27 = vsub.f32 %v179_v16, %v237_v26 }
 0x247   :  { %v243_v28 = vmul.f32 1.442695, %v241_v27  ;;  %v1427_v27 = vmov 0.0|0.0  }
 0x249   :  { %1404 = vpow2.f32 %v243_v28  ;;  %v582_v28 = vld [vmem:[%s1692_s6] sm:$0xff] }
 0x24c   :  { %v240_v29 = vpop.xlane.xlu0 %239 }
 0x24d   :  { %v242_v30 = vsub.f32 %v228_v21, %v240_v29  ;;  %v583_v29 = vld [vmem:[%s1692_s6 + $0x8] sm:$0xff] }
 0x24f   :  { %v245_v31 = vmul.f32 1.442695, %v242_v30  ;;  %v1601_v30 = vpack.c.bf16 %v583_v29, %v582_v28 }
 0x250   :  { %v354_v48 = vpop.permute.xlu0 %353 }
 0x251   :  { %1406 = vpow2.f32 %v245_v31  ;;  %v584_v31 = vld [vmem:[%s1692_s6 + $0x10] sm:$0xff] }
 0x253   :  { %v1405_v32 = vpop.eup %1404 }
 0x254   :  { %v247_v33 = vsel %vm234_vm3, %v1405_v32, 0.0 }
 0x255   :  { %248 = vadd.xlane.f32.xlu1 %v247_v33 }
 0x25b   :  { %v1407_v34 = vpop.eup %1406 }
 0x25c   :  { %v250_v35 = vsel %vm234_vm3, %v1407_v34, 0.0 }
 0x25d   :  { %251 = vadd.xlane.f32.xlu1 %v250_v35 }
 0x26e   :  { %405 = vrot.lane.b32.xlu1 %v134_v15, %s1426_s3 }
 0x2e2   :  { %v249_v38 = vpop.xlane.xlu1 %248 }
 0x2e3   :  { %1408 = vrcp.f32 %v249_v38 }
 0x2ea   :  { %v252_v39 = vpop.xlane.xlu1 %251 }
 0x2eb   :  { %1410 = vrcp.f32 %v252_v39 }
 0x2ed   :  { %v1409_v40 = vpop.eup %1408 }
 0x2ee   :  { %v255_v41 = vmul.f32 %v1409_v40, %v1405_v32  ;;  %v406_v49 = vpop.permute.xlu1 %405  ;;  %v585_v32 = vld [vmem:[%s1692_s6 + $0x18] sm:$0xff] }
 0x2ef   :  { %v1613_v33 = vpack.c.bf16 %v585_v32, %v584_v31 }
 0x2f0   :  { %v257_v43 = vpack.c.bf16 %v255_v41, %v255_v41 }
 0x2f2   :  { %1268 = vmatmul.mubr.msk.bf16.vlgmr.msra.gmra.mrb[4].mxu0 %vm259_vm4, %v257_v43 }
 0x2f3   :  { %1278 = vmatpush3.bf16.msra.mxu0 %v1398_v42  ;;  %1279 = vmatprep.mubr.msk.bf16.mxu0 %vm1425_vm0, %v1424_v0 }
 0x2f4   :  { %1289 = vmatprep.subr.bf16.mxu0 %v1424_v0 }
 0x2f5   :  { %v1411_v44 = vpop.eup %1410 }
 0x2f6   :  { %v256_v45 = vmul.f32 %v1411_v44, %v1407_v34 }
 0x2f8   :  { %v258_v47 = vpack.c.bf16 %v256_v45, %v256_v45 }
 0x2fa   :  { %1274 = vmatmul.mubr.msk.bf16.vlgmr.msra.gmra.mrb[8].mxu1 %vm259_vm4, %v258_v47  ;;  %1280 = vmatmul.mubr.msk.bf16.vlgmr.msra.gmra.mrb[8].mxu0 %vm141_vm2, %v354_v48 }
 0x2fb   :  { %1284 = vmatpush3.bf16.msra.mxu1 %v1399_v46  ;;  %1285 = vmatprep.mubr.msk.bf16.mxu1 %vm1425_vm0, %v1424_v0 }
 0x2fc   :  { %1291 = vmatprep.mubr.msk.bf16.mxu0 %vm1425_vm0, %v1424_v0  ;;  %1295 = vmatprep.subr.bf16.mxu1 %v1424_v0 }
 0x2fd   :  { %1290 = vmatpush3.bf16.xpose.msra.mxu0 %v484_v17 }
 0x2fe   :  { %1361 = vmatprep.subr.bf16.mxu0 %v1427_v27 }
 0x302   :  { %1286 = vmatmul.mubr.msk.bf16.vlgmr.msra.gmra.mrb[12].mxu1 %vm141_vm2, %v406_v49 }
 0x303   :  { %1297 = vmatprep.mubr.msk.bf16.mxu1 %vm1425_vm0, %v1424_v0 }
 0x304   :  { %1296 = vmatpush3.bf16.xpose.msra.mxu1 %v530_v18 }
 0x305   :  { %1367 = vmatprep.subr.bf16.mxu1 %v1427_v27 }
 0x3c5   :  { %v1577_v50 = vpop.f32.mrb[4].mxu0 }
 0x3c6   :  { %v1269_v51 = vpop.f32.mrb[5].mxu0 }
 0x3c7   :  { %v303_v52 = vpop.f32.mrb[6].mxu0 }
 0x3c8   :  { %v1270_v53 = vpop.f32.mrb[7].mxu0 }
 0x3cd   :  { %v1579_v54 = vpop.f32.mrb[8].mxu1  ;;  %v398_v55 = vpop.f32.mrb[8].mxu0 }
 0x3ce   :  { %v1275_v56 = vpop.f32.mrb[9].mxu1  ;;  %v1281_v57 = vpop.f32.mrb[9].mxu0  ;;  %v456_v58 = vsel %vm234_vm3, %v398_v55, -inf }
 0x3cf   :  { %v349_v59 = vpop.f32.mrb[10].mxu1  ;;  %457 = vmax.xlane.f32.xlu1 %v456_v58  ;;  %v401_v60 = vpop.f32.mrb[10].mxu0 }
 0x3d0   :  { %v1276_v61 = vpop.f32.mrb[11].mxu1  ;;  %v1282_v62 = vpop.f32.mrb[11].mxu0  ;;  %v1186_v60 = vld [vmem:[%s1694_s4] ss:$0 sm:$0xff] }
 0x3d1   :  { %v1187_v62 = vld [vmem:[%s1695_s5] ss:$0 sm:$0xff] }
 0x3d5   :  { %v450_v63 = vpop.f32.mrb[12].mxu1 }
 0x3d6   :  { %v1287_v1 = vpop.f32.mrb[13].mxu1  ;;  %v459_v2 = vsel %vm234_vm3, %v450_v63, -inf }
 0x3d7   :  { %460 = vmax.xlane.f32.xlu0 %v459_v2  ;;  %v453_v3 = vpop.f32.mrb[14].mxu1  ;;  %v759_v2 = vcombine.high %v1186_v60, %v1186_v60 }
 0x3d8   :  { %v1288_v4 = vpop.f32.mrb[15].mxu1 }
 0x45c   :  { %v458_v5 = vpop.xlane.xlu1 %457 }
 0x45d   :  { %v462_v6 = vsub.f32 %v398_v55, %v458_v5  ;;  %v769_v5 = vcombine.high %v1187_v62, %v1187_v62 }
 0x45f   :  { %v464_v7 = vmul.f32 1.442695, %v462_v6 }
 0x461   :  { %1412 = vpow2.f32 %v464_v7 }
 0x464   :  { %v461_v9 = vpop.xlane.xlu0 %460 }
 0x465   :  { %v463_v10 = vsub.f32 %v450_v63, %v461_v9 }
 0x467   :  { %v466_v11 = vmul.f32 1.442695, %v463_v10 }
 0x469   :  { %1414 = vpow2.f32 %v466_v11 }
 0x46b   :  { %v1413_v12 = vpop.eup %1412 }
 0x46c   :  { %v468_v13 = vsel %vm234_vm3, %v1413_v12, 0.0 }
 0x46d   :  { %469 = vadd.xlane.f32.xlu0 %v468_v13  ;;  %v1403_v13 = vld [vmem:[%s1696_s9 + $0x8] sm:$0xff]  }
 0x473   :  { %v1415_v15 = vpop.eup %1414 }
 0x474   :  { %v471_v16 = vsel %vm234_vm3, %v1415_v15, 0.0 }
 0x475   :  { %472 = vadd.xlane.f32.xlu1 %v471_v16 }
 0x4fa   :  { %v470_v19 = vpop.xlane.xlu0 %469 }
 0x4fb   :  { %1416 = vrcp.f32 %v470_v19 }
 0x502   :  { %v473_v20 = vpop.xlane.xlu1 %472 }
 0x503   :  { %1418 = vrcp.f32 %v473_v20 }
 0x505   :  { %v1417_v21 = vpop.eup %1416 }
 0x506   :  { %v476_v22 = vmul.f32 %v1417_v21, %v1413_v12  ;;  %v1402_v12 = vld [vmem:[%s1696_s9] sm:$0xff]  }
 0x508   :  { %v478_v23 = vpack.c.bf16 %v476_v22, %v476_v22 }
 0x50a   :  { %1292 = vmatmul.mubr.msk.bf16.vlgmr.msra.gmra.mrb[12].mxu0 %vm259_vm4, %v478_v23  ;;  %v1192_v23 = vld [vmem:[%s1698_s10] ss:$0 sm:$0xff] }
 0x50b   :  { %1309 = vmatprep.mubr.msk.f32.mxu0 %vm1425_vm0, %v1424_v0  ;;  %1363 = vmatpush3.bf16.msra.mxu0 %v1601_v30 }
 0x50c   :  { %1364 = vmatprep.subr.bf16.mxu0 %v1427_v27 }
 0x50d   :  { %v1419_v24 = vpop.eup %1418 }
 0x50e   :  { %v477_v25 = vmul.f32 %v1419_v24, %v1415_v15  ;;  %v1188_v15 = vld [vmem:[%s1697_s8] ss:$0 sm:$0xff] }
 0x50f   :  { %1366 = vmatpush3.bf16.msra.mxu0 %v1613_v33 }
 0x510   :  { %v479_v26 = vpack.c.bf16 %v477_v25, %v477_v25  ;;  %1323 = vmatprep.subr.bf16.mxu0 %v1424_v0 }
 0x512   :  { %1298 = vmatmul.mubr.msk.bf16.vlgmr.msra.gmra.mrb[16].mxu1 %vm259_vm4, %v479_v26 }
 0x513   :  { %1320 = vmatprep.mubr.msk.f32.mxu1 %vm1425_vm0, %v1424_v0  ;;  %1369 = vmatpush3.bf16.msra.mxu1 %v1601_v30 }
 0x514   :  { %1370 = vmatprep.subr.bf16.mxu1 %v1427_v27 }
 0x517   :  { %1372 = vmatpush3.bf16.msra.mxu1 %v1613_v33 }
 0x518   :  { %1331 = vmatprep.subr.bf16.mxu1 %v1424_v0 }
 0x5dd   :  { %v520_v34 = vpop.f32.mrb[12].mxu0 }
 0x5de   :  { %574 = vrot.lane.b32.xlu0 %v520_v34, %s1428_s29  ;;  %v1293_v35 = vpop.f32.mrb[13].mxu0 }
 0x5df   :  { %v523_v36 = vpop.f32.mrb[14].mxu0 }
 0x5e0   :  { %v1294_v37 = vpop.f32.mrb[15].mxu0 }
 0x5e5   :  { %v566_v38 = vpop.f32.mrb[16].mxu1 }
 0x5e6   :  { %576 = vrot.lane.b32.xlu1 %v566_v38, %s1428_s29  ;;  %v1299_v39 = vpop.f32.mrb[17].mxu1 }
 0x5e7   :  { %v569_v40 = vpop.f32.mrb[18].mxu1 }
 0x5e8   :  { %v1300_v41 = vpop.f32.mrb[19].mxu1 }
 0x650   :  { %v575_v42 = vpop.permute.xlu0 %574 }
 0x651   :  { %v580_v43 = vsel %vm141_vm2, %v1577_v50, %v575_v42 }
 0x652   :  { %v586_v46 = vadd.f32 %v580_v43, %v1529_v8  ;;  %v1400_v8 = vld [vmem:[%s1693_s7] sm:$0xff]   ;;  %v1104_v43 = vlaneseq }
 0x658   :  { %v577_v44 = vpop.permute.xlu1 %576 }
 0x659   :  { %v581_v45 = vsel %vm141_vm2, %v1579_v54, %v577_v44  ;;  %v1198_v44 = vld [vmem:[%s1699_s11] ss:$0 sm:$0xff]  ;;  %s1429_s11 = smov 96  }
 0x65a   :  { %v587_v47 = vadd.f32 %v581_v45, %v1541_v14  ;;  %v1401_v14 = vld [vmem:[%s1693_s7 + $0x8] sm:$0xff]  }
 0x65c   :  { %v592_v48 = vcombine.low %v586_v46, %v587_v47 }
 0x65e   :  { %1310 = vmatmul.mubr.msk.f32.vlgmr.msra.gmra.mrb[16].mxu0 %vm78_vm1, %v592_v48 }
 0x65f   :  { %1327 = vmatprep.mubr.msk.bf16.mxu0 %vm1425_vm0, %v1424_v0  ;;  %1324 = vmatpush3.bf16.msra.mxu0 %v1400_v8 }
 0x660   :  { %1325 = vmatprep.subr.bf16.mxu0 %v1424_v0 }
 0x663   :  { %1326 = vmatpush3.bf16.msra.mxu0 %v1401_v14 }
 0x664   :  { %1373 = vmatprep.subr.bf16.mxu0 %v1427_v27 }
 0x731   :  { %v661_v49 = vpop.f32.mrb[16].mxu0 }
 0x732   :  { %v666_v51 = vcombine.high %v661_v49, %v661_v49  ;;  %v668_v52 = vsub.f32 %v586_v46, %v661_v49  ;;  %v1311_v53 = vpop.f32.mrb[17].mxu0  ;;  %v1199_v46 = vld [vmem:[%s1700_s12] ss:$0 sm:$0xff]  ;;  %s1430_s12 = smov 32  }
 0x734   :  { %v669_v55 = vsub.f32 %v587_v47, %v666_v51  ;;  %v670_v50 = vmul.f32 %v668_v52, %v668_v52  ;;  %v1105_v47 = vshrl.u32 %v1104_v43, 7  ;;  %v1088_v51 = vcombine.high %v1198_v44, %v1198_v44 }
 0x736   :  { %v671_v56 = vmul.f32 %v669_v55, %v669_v55  ;;  %v1117_v14 = vsub.s32 1, %v1105_v47 }
 0x738   :  { %v674_v57 = vcombine.low %v670_v50, %v671_v56  ;;  %v1141_v50 = vsub.s32 3, %v1105_v47  ;;  %v1106_v56 = vsub.s32 0, %v1105_v47 }
 0x73a   :  { %1321 = vmatmul.mubr.msk.f32.vlgmr.msra.gmra.mrb[20].mxu1 %vm78_vm1, %v674_v57 }
 0x73b   :  { %1335 = vmatprep.mubr.msk.bf16.mxu1 %vm1425_vm0, %v1424_v0  ;;  %1332 = vmatpush3.bf16.msra.mxu1 %v1402_v12 }
 0x73c   :  { %1333 = vmatprep.subr.bf16.mxu1 %v1424_v0 }
 0x73f   :  { %1334 = vmatpush3.bf16.msra.mxu1 %v1403_v13 }
 0x740   :  { %1379 = vmatprep.subr.bf16.mxu1 %v1427_v27 }
 0x80d   :  { %v743_v54 = vpop.f32.mrb[20].mxu1 }
 0x80e   :  { %v744_v58 = vadd.f32 1e-05, %v743_v54  ;;  %v1322_v59 = vpop.f32.mrb[21].mxu1 }
 0x80f   :  { %v1129_v59 = vsub.s32 2, %v1105_v47 }
 0x810   :  { %1420 = vrsqrt.f32 %v744_v58 }
 0x81a   :  { %v1421_v61 = vpop.eup %1420 }
 0x81b   :  { %v749_v63 = vcombine.high %v1421_v61, %v1421_v61  ;;  %v751_v1 = vmul.f32 %v1421_v61, %v668_v52 }
 0x81d   :  { %v752_v3 = vmul.f32 %v749_v63, %v669_v55  ;;  %v761_v4 = vmul.f32 %v1186_v60, %v751_v1  ;;  %v1098_v55 = vcombine.high %v1199_v46, %v1199_v46 }
 0x81f   :  { %v762_v6 = vmul.f32 %v759_v2, %v752_v3  ;;  %v771_v7 = vadd.f32 %v1187_v62, %v761_v4 }
 0x821   :  { %v772_v9 = vadd.f32 %v769_v5, %v762_v6 }
 0x823   :  { %v775_v10 = vcombine.low %v771_v7, %v772_v9 }
 0x825   :  { %v777_v11 = vpack.c.bf16 %v775_v10, %v775_v10 }
 0x827   :  { %1328 = vmatmul.mubr.msk.bf16.vlgmr.msra.gmra.mrb[20].mxu0 %vm78_vm1, %v777_v11 }
 0x828   :  { %1375 = vmatpush3.bf16.msra.mxu0 %v1601_v30  ;;  %1347 = vmatprep.mubr.msk.f32.mxu0 %vm1425_vm0, %v1424_v0 }
 0x829   :  { %1376 = vmatprep.subr.bf16.mxu0 %v1427_v27 }
 0x82c   :  { %1378 = vmatpush3.bf16.msra.mxu0 %v1613_v33 }
 0x8fa   :  { %v838_v16 = vpop.f32.mrb[20].mxu0 }
 0x8fb   :  { %v839_v17 = vadd.f32 %v1188_v15, %v838_v16  ;;  %v1329_v18 = vpop.f32.mrb[21].mxu0 }
 0x8fc   :  { %v841_v19 = vpop.f32.mrb[22].mxu0 }
 0x8fd   :  { %v844_v20 = vmax.f32 %v839_v17, 0.0  ;;  %v1330_v21 = vpop.f32.mrb[23].mxu0 }
 0x8ff   :  { %v845_v22 = vpack.c.bf16 %v844_v20, %v844_v20 }
 0x901   :  { %1336 = vmatmul.mubr.msk.bf16.vlgmr.msra.gmra.mrb[24].mxu1 %vm78_vm1, %v845_v22 }
 0x902   :  { %1381 = vmatpush3.bf16.msra.mxu1 %v1601_v30  ;;  %1358 = vmatprep.mubr.msk.f32.mxu1 %vm1425_vm0, %v1424_v0 }
 0x903   :  { %1382 = vmatprep.subr.bf16.mxu1 %v1427_v27 }
 0x906   :  { %1384 = vmatpush3.bf16.msra.mxu1 %v1613_v33 }
 0x9d4   :  { %v906_v24 = vpop.f32.mrb[24].mxu1 }
 0x9d5   :  { %v907_v25 = vadd.f32 %v1192_v23, %v906_v24  ;;  %v1337_v26 = vpop.f32.mrb[25].mxu1 }
 0x9d6   :  { %v909_v28 = vpop.f32.mrb[26].mxu1 }
 0x9d7   :  { %v913_v29 = vcombine.high %v907_v25, %v907_v25  ;;  %v1338_v31 = vpop.f32.mrb[27].mxu1  ;;  %v915_v32 = vadd.f32 %v907_v25, %v771_v7 }
 0x9d9   :  { %v916_v34 = vadd.f32 %v913_v29, %v772_v9 }
 0x9db   :  { %v921_v30 = vcombine.low %v915_v32, %v916_v34 }
 0x9dd   :  { %1348 = vmatmul.mubr.msk.f32.vlgmr.msra.gmra.mrb[18].mxu0 %vm78_vm1, %v921_v30 }
 0xab0   :  { %v990_v0 = vpop.f32.mrb[18].mxu0 }
 0xab1   :  { %v995_v35 = vcombine.high %v990_v0, %v990_v0  ;;  %v997_v27 = vsub.f32 %v915_v32, %v990_v0  ;;  %v1349_v36 = vpop.f32.mrb[19].mxu0 }
 0xab3   :  { %v998_v33 = vsub.f32 %v916_v34, %v995_v35  ;;  %v999_v37 = vmul.f32 %v997_v27, %v997_v27 }
 0xab5   :  { %v1000_v38 = vmul.f32 %v998_v33, %v998_v33 }
 0xab7   :  { %v1003_v39 = vcombine.low %v999_v37, %v1000_v38 }
 0xab9   :  { %1359 = vmatmul.mubr.msk.f32.vlgmr.msra.gmra.mrb[22].mxu1 %vm78_vm1, %v1003_v39 }
 0xb8c   :  { %v1072_v40 = vpop.f32.mrb[22].mxu1 }
 0xb8d   :  { %v1073_v41 = vadd.f32 1e-05, %v1072_v40  ;;  %v1360_v42 = vpop.f32.mrb[23].mxu1 }
 0xb8f   :  { %1422 = vrsqrt.f32 %v1073_v41 }
 0xb99   :  { %v1423_v45 = vpop.eup %1422 }
 0xb9a   :  { %v1078_v48 = vcombine.high %v1423_v45, %v1423_v45  ;;  %v1080_v49 = vmul.f32 %v1423_v45, %v997_v27 }
 0xb9c   :  { %v1081_v52 = vmul.f32 %v1078_v48, %v998_v33  ;;  %v1090_v53 = vmul.f32 %v1198_v44, %v1080_v49 }
 0xb9e   :  { %v1091_v57 = vmul.f32 %v1088_v51, %v1081_v52  ;;  %v1100_v8 = vadd.f32 %v1199_v46, %v1090_v53 }
 0xba0   :  { %v1101_v54 = vadd.f32 %v1098_v55, %v1091_v57  ;;  %v1142_v58 = vrot.slane %v1100_v8, %v1141_v50  ;;  %v1107_v60 = vrot.slane %v1100_v8, %v1106_v56  ;;  %v1118_v62 = vrot.slane %v1100_v8, %v1117_v14 }
 0xba1   :  { %v1130_v6 = vrot.slane %v1100_v8, %v1129_v59 }
 0xba2   :  { %v1146_v61 = vrot.slane %v1101_v54, %v1141_v50  ;;  %v1122_v63 = vrot.slane %v1101_v54, %v1117_v14  ;;  %v1111_v1 = vrot.slane %v1101_v54, %v1106_v56  ;;  %v1134_v4 = vrot.slane %v1101_v54, %v1129_v59 }
 0xba4   :  { %v1147_v2 = vsel %vm1112_vm5, %v1146_v61, %v1142_v58  ;;  %v1123_v3 = vsel %vm1112_vm5, %v1122_v63, %v1118_v62  ;;  %v1113_v5 = vsel %vm1112_vm5, %v1111_v1, %v1107_v60  ;;  %v1135_v7 = vsel %vm1112_vm5, %v1134_v4, %v1130_v6 }
 0xba5   :  { %1148 = vrot.lane.b32.xlu0 %v1147_v2, %s1429_s11  ;;  %1124 = vrot.lane.b32.xlu1 %v1123_v3, %s1430_s12 }
 0xba9   :  { %1136 = vrot.lane.b32.xlu1 %v1135_v7, %s1431_s22 }
 0xc17   :  { %v1125_v9 = vpop.permute.xlu1 %1124  ;;  %v1149_v12 = vpop.permute.xlu0 %1148 }
 0xc18   :  { %v1151_v10 = vsel %vm78_vm1, %v1113_v5, %v1125_v9 }
 0xc1b   :  { %v1137_v11 = vpop.permute.xlu1 %1136 }
 0xc1c   :  { %v1152_v13 = vsel %vm259_vm4, %v1151_v10, %v1137_v11 }
 0xc1d   :  { %v1154_v15 = vsel %vm1153_vm6, %v1152_v13, %v1149_v12 }
 0xc1e   :  { %1155 = vst [vmem:[%s1701_s13] sm:$0x3] %v1154_v15 }

</bundles_post_ra>
